<compile_context>
chip_gen: v7x
topology: tpu7x:2x2x1
jax: 0.10.0
libtpu: 0.0.40
codegen_flags: <defaults>
</compile_context>

<pallas_src>
import jax
import jax.numpy as jnp
from jax.experimental import pallas as pl
from jax.experimental.pallas import tpu as pltpu

INPUT_DIM = 784
HIDDEN_DIM = 400
LATENT_DIM = 20

# Lane-padded sizes (multiples of 128) -- only where lane density matters.
OUT_PAD = 896     # decoder output 784 -> 896 (lane-dense stores)
HID_PAD = 512     # 400 -> 512
LAT_PAD = 128     # 20  -> 128


def _round_up(n, m):
    return ((n + m - 1) // m) * m


def _vae_kernel(x_ref, eps_ref,
                w_enc_ref, b_enc_ref,
                w_ml_ref, b_ml_ref,
                w_d1_ref, b_d1_ref,
                w_d2_ref, b_d2_ref,
                recon_ref, ml_ref):
    # x arrives as f32 (tb, 784); cast to bf16 in-kernel (VPU, hidden under DMA).
    x = x_ref[...].astype(jnp.bfloat16)
    eps = eps_ref[...]                                # (tb, LAT_PAD) f32

    # --- encoder: e1 = relu(x @ W_enc + b_enc) --- (K = 784, unpadded)
    e1 = jnp.dot(x, w_enc_ref[...],
                 preferred_element_type=jnp.float32) + b_enc_ref[...]
    e1 = jnp.maximum(e1, 0.0)                         # (tb, HID_PAD) f32

    # --- fused mu|logvar projection: single lane-dense (HID_PAD, 2*LAT_PAD) matmul ---
    ml = jnp.dot(e1.astype(jnp.bfloat16), w_ml_ref[...],
                 preferred_element_type=jnp.float32) + b_ml_ref[...]
    mu = ml[:, :LAT_PAD]                              # (tb, LAT_PAD)
    logvar = ml[:, LAT_PAD:]                          # (tb, LAT_PAD)

    # --- reparameterization trick: z = mu + exp(0.5*logvar) * eps (f32 VPU/EUP) ---
    std = jnp.exp(0.5 * logvar)
    z = mu + std * eps                                # (tb, LAT_PAD)

    # --- decoder ---
    d1 = jnp.dot(z.astype(jnp.bfloat16), w_d1_ref[...],
                 preferred_element_type=jnp.float32) + b_d1_ref[...]
    d1 = jnp.maximum(d1, 0.0)                         # (tb, HID_PAD)

    out = jnp.dot(d1.astype(jnp.bfloat16), w_d2_ref[...],
                  preferred_element_type=jnp.float32) + b_d2_ref[...]
    out = jax.nn.sigmoid(out)                         # (tb, OUT_PAD) f32

    # bf16 store: recon is the dominant output stream -> half the HBM bytes.
    recon_ref[...] = out.astype(jnp.bfloat16)
    ml_ref[...] = ml                                  # single wide mu|logvar stream


def _pack_params(params):
    """Pad feature dims to multiples of 128 where needed, fuse mu|logvar
    weights, cast matmul weights to bf16 (biases stay f32). Encoder K (784)
    is intentionally left unpadded."""
    w_enc = params["w_enc"]                           # (784, 400)
    w_enc_p = jnp.zeros((INPUT_DIM, HID_PAD), jnp.float32)
    w_enc_p = w_enc_p.at[:, :HIDDEN_DIM].set(w_enc).astype(jnp.bfloat16)
    b_enc_p = jnp.zeros((1, HID_PAD), jnp.float32).at[:, :HIDDEN_DIM].set(params["b_enc"])

    # Fused mean|logvar projection: lanes [0:LAT_PAD) -> mu, [LAT_PAD:2*LAT_PAD) -> logvar.
    w_ml = jnp.zeros((HID_PAD, 2 * LAT_PAD), jnp.float32)
    w_ml = w_ml.at[:HIDDEN_DIM, :LATENT_DIM].set(params["w_mu"])
    w_ml = w_ml.at[:HIDDEN_DIM, LAT_PAD:LAT_PAD + LATENT_DIM].set(params["w_lv"])
    w_ml = w_ml.astype(jnp.bfloat16)
    b_ml = jnp.zeros((1, 2 * LAT_PAD), jnp.float32)
    b_ml = b_ml.at[:, :LATENT_DIM].set(params["b_mu"])
    b_ml = b_ml.at[:, LAT_PAD:LAT_PAD + LATENT_DIM].set(params["b_lv"])

    w_d1 = jnp.zeros((LAT_PAD, HID_PAD), jnp.float32)
    w_d1 = w_d1.at[:LATENT_DIM, :HIDDEN_DIM].set(params["w_d1"]).astype(jnp.bfloat16)
    b_d1 = jnp.zeros((1, HID_PAD), jnp.float32).at[:, :HIDDEN_DIM].set(params["b_d1"])

    w_d2 = jnp.zeros((HID_PAD, OUT_PAD), jnp.float32)
    w_d2 = w_d2.at[:HIDDEN_DIM, :INPUT_DIM].set(params["w_d2"]).astype(jnp.bfloat16)
    b_d2 = jnp.zeros((1, OUT_PAD), jnp.float32).at[:, :INPUT_DIM].set(params["b_d2"])

    return (w_enc_p, b_enc_p, w_ml, b_ml, w_d1, b_d1, w_d2, b_d2)


def vae_forward(x, eps, params, *, tb=None):
    """x: (B, 1, 28, 28) NCHW float32.  eps: (B, LATENT_DIM) ~ N(0,1).
    Returns (reconstructed (B,1,28,28) f32, mu (B,LATENT_DIM), logvar (B,LATENT_DIM))."""
    B = x.shape[0]
    x_flat = x.reshape(B, INPUT_DIM).astype(jnp.float32)   # glue: .view(-1, 784)

    # Batch tile: aim for >=2 grid steps (keeps both v7x TensorCores busy via
    # "parallel" semantics), cap at 512 rows (85%+ of HBM roofline territory on
    # v6e, VMEM ~12 MB << limits), multiples of 16 for bf16 sublane packing.
    if tb is None:
        tb = min(512, max(16, _round_up(pl.cdiv(B, 2), 16)))
    B_pad = _round_up(B, tb)
    grid = (B_pad // tb,)

    # Only pad when the batch doesn't divide the tile (no full pad/cast
    # round-trip of x in the common case; bf16 cast happens in-kernel).
    if B_pad != B:
        x_flat = jnp.pad(x_flat, ((0, B_pad - B), (0, 0)))
    eps_p = jnp.pad(eps.astype(jnp.float32),
                    ((0, B_pad - B), (0, LAT_PAD - LATENT_DIM)))
    # TODO(synk): generate eps in-kernel (pltpu.prng_seed + pltpu.stateful_normal)
    # to drop this (B_pad, 128) HBM input entirely.

    (w_enc, b_enc, w_ml, b_ml, w_d1, b_d1, w_d2, b_d2) = _pack_params(params)

    def batch_spec(width):
        return pl.BlockSpec((tb, width), lambda i: (i, 0))

    def resident_spec(shape):
        # Constant index_map: block never changes across the grid -> weights
        # stay VMEM-resident (DMA'd once). Could add pipeline_mode=pl.Buffered(1)
        # to drop the dead second buffer if tiles are pushed to 1024 rows.
        return pl.BlockSpec(shape, lambda i: (0, 0))

    # Advisory cost estimate (per full call, on padded shapes).
    flops = 2 * B_pad * (INPUT_DIM * HID_PAD + HID_PAD * 2 * LAT_PAD
                         + LAT_PAD * HID_PAD + HID_PAD * OUT_PAD)
    transcendentals = B_pad * (LAT_PAD + OUT_PAD)            # exp + sigmoid
    weight_bytes = 2 * (INPUT_DIM * HID_PAD + HID_PAD * 2 * LAT_PAD
                        + LAT_PAD * HID_PAD + HID_PAD * OUT_PAD)
    bias_bytes = 4 * (HID_PAD + 2 * LAT_PAD + HID_PAD + OUT_PAD)
    act_bytes = B_pad * (4 * INPUT_DIM + 4 * LAT_PAD        # x, eps in
                         + 2 * OUT_PAD + 4 * 2 * LAT_PAD)   # recon (bf16), ml out
    cost = pl.CostEstimate(flops=flops, transcendentals=transcendentals,
                           bytes_accessed=weight_bytes + bias_bytes + act_bytes)

    recon_p, ml_p = pl.pallas_call(
        _vae_kernel,
        grid=grid,
        out_shape=(
            jax.ShapeDtypeStruct((B_pad, OUT_PAD), jnp.bfloat16),
            jax.ShapeDtypeStruct((B_pad, 2 * LAT_PAD), jnp.float32),
        ),
        in_specs=[
            batch_spec(INPUT_DIM),                    # x (f32, unpadded lanes)
            batch_spec(LAT_PAD),                      # eps
            resident_spec((INPUT_DIM, HID_PAD)),      # w_enc (K = 784, unpadded)
            resident_spec((1, HID_PAD)),              # b_enc
            resident_spec((HID_PAD, 2 * LAT_PAD)),    # w_ml (fused mu|logvar)
            resident_spec((1, 2 * LAT_PAD)),          # b_ml
            resident_spec((LAT_PAD, HID_PAD)),        # w_d1
            resident_spec((1, HID_PAD)),              # b_d1
            resident_spec((HID_PAD, OUT_PAD)),        # w_d2
            resident_spec((1, OUT_PAD)),              # b_d2
        ],
        out_specs=(
            batch_spec(OUT_PAD),                      # recon (bf16)
            batch_spec(2 * LAT_PAD),                  # fused mu|logvar (f32)
        ),
        compiler_params=pltpu.CompilerParams(
            dimension_semantics=("parallel",)),
        cost_estimate=cost,
    )(x_flat, eps_p, w_enc, b_enc, w_ml, b_ml, w_d1, b_d1, w_d2, b_d2)

    reconstructed = recon_p[:B, :INPUT_DIM].astype(jnp.float32).reshape(-1, 1, 28, 28)
    mu = ml_p[:B, :LATENT_DIM]
    logvar = ml_p[:B, LAT_PAD:LAT_PAD + LATENT_DIM]
    return reconstructed, mu, logvar


def init_params(key):
    """Deterministic synthetic parameter init (PyTorch-Linear-like uniform).
    Weights stored as (in_features, out_features) in f32 (unpadded)."""
    ks = jax.random.split(key, 10)

    def linear(kw, kb, fan_in, fan_out):
        bound = 1.0 / jnp.sqrt(fan_in)
        w = jax.random.uniform(kw, (fan_in, fan_out), jnp.float32, -bound, bound)
        b = jax.random.uniform(kb, (1, fan_out), jnp.float32, -bound, bound)
        return w, b

    w_enc, b_enc = linear(ks[0], ks[1], INPUT_DIM, HIDDEN_DIM)
    w_mu, b_mu = linear(ks[2], ks[3], HIDDEN_DIM, LATENT_DIM)
    w_lv, b_lv = linear(ks[4], ks[5], HIDDEN_DIM, LATENT_DIM)
    w_d1, b_d1 = linear(ks[6], ks[7], LATENT_DIM, HIDDEN_DIM)
    w_d2, b_d2 = linear(ks[8], ks[9], HIDDEN_DIM, INPUT_DIM)
    return dict(w_enc=w_enc, b_enc=b_enc, w_mu=w_mu, b_mu=b_mu,
                w_lv=w_lv, b_lv=b_lv, w_d1=w_d1, b_d1=b_d1,
                w_d2=w_d2, b_d2=b_d2)


def reference_forward(x, eps, params):
    """Pure-JAX reference with the same bf16-operand / f32-accumulate matmul
    semantics as the kernel (the PyTorch module is f32; bf16 MXU operands
    match it to ~1e-2)."""
    B = x.shape[0]

    def lin(a, w, b):
        return jnp.dot(a.astype(jnp.bfloat16), w.astype(jnp.bfloat16),
                       preferred_element_type=jnp.float32) + b

    xf = x.reshape(B, INPUT_DIM)
    e1 = jnp.maximum(lin(xf, params["w_enc"], params["b_enc"]), 0.0)
    mu = lin(e1, params["w_mu"], params["b_mu"])
    logvar = lin(e1, params["w_lv"], params["b_lv"])
    z = mu + jnp.exp(0.5 * logvar) * eps
    d1 = jnp.maximum(lin(z, params["w_d1"], params["b_d1"]), 0.0)
    out = jax.nn.sigmoid(lin(d1, params["w_d2"], params["b_d2"]))
    return out.reshape(-1, 1, 28, 28), mu, logvar


if __name__ == "__main__":
    key = jax.random.PRNGKey(0)
    k_param, k_x, k_eps = jax.random.split(key, 3)

    B = 8
    params = init_params(k_param)
    x = jax.random.uniform(k_x, (B, 1, 28, 28), jnp.float32)      # NCHW, like MNIST
    # eps ~ N(0,1) generated outside the kernel (torch.randn_like equivalent).
    eps = jax.random.normal(k_eps, (B, LATENT_DIM), jnp.float32)

    recon, mu, logvar = jax.block_until_ready(
        jax.jit(vae_forward)(x, eps, params))

    r_recon, r_mu, r_logvar = reference_forward(x, eps, params)
    assert recon.shape == (B, 1, 28, 28) and recon.dtype == jnp.float32
    assert mu.shape == (B, LATENT_DIM) and logvar.shape == (B, LATENT_DIM)
    # bf16 MXU operands (f32 accumulation) + bf16 recon store: compare against
    # the bf16-matched reference with a tolerance absorbing rounding drift.
    assert jnp.allclose(recon, r_recon, atol=2e-2, rtol=2e-2)
    assert jnp.allclose(mu, r_mu, atol=2e-2, rtol=2e-2)
    assert jnp.allclose(logvar, r_logvar, atol=2e-2, rtol=2e-2)

    print("KERNEL_OK")
</pallas_src>

<mosaic_0001>
module attributes {stable_mosaic.version = 11 : i64} {
  func.func @_vae_kernel(%arg0: i32, %arg1: memref<16x784xf32, #tpu.memory_space<vmem>>, %arg2: memref<16x128xf32, #tpu.memory_space<vmem>>, %arg3: memref<784x512xbf16, #tpu.memory_space<vmem>>, %arg4: memref<1x512xf32, #tpu.memory_space<vmem>>, %arg5: memref<512x256xbf16, #tpu.memory_space<vmem>>, %arg6: memref<1x256xf32, #tpu.memory_space<vmem>>, %arg7: memref<128x512xbf16, #tpu.memory_space<vmem>>, %arg8: memref<1x512xf32, #tpu.memory_space<vmem>>, %arg9: memref<512x896xbf16, #tpu.memory_space<vmem>>, %arg10: memref<1x896xf32, #tpu.memory_space<vmem>>, %arg11: memref<16x896xbf16, #tpu.memory_space<vmem>>, %arg12: memref<16x256xf32, #tpu.memory_space<vmem>>) attributes {dimension_semantics = [#tpu.dimension_semantics<parallel>], iteration_bounds = array<i64: 1>, scalar_prefetch = 0 : i64, scratch_operands = 0 : i64, tpu.core_type = #tpu.core_type<tc>, window_params = [{transform_indices = @transform_0, window_bounds = array<i64: 16, 784>}, {transform_indices = @transform_1, window_bounds = array<i64: 16, 128>}, {pipeline_mode = #tpu.pipeline_mode<synchronous>, transform_indices = @transform_2, window_bounds = array<i64: 784, 512>}, {pipeline_mode = #tpu.pipeline_mode<synchronous>, transform_indices = @transform_3, window_bounds = array<i64: 1, 512>}, {pipeline_mode = #tpu.pipeline_mode<synchronous>, transform_indices = @transform_4, window_bounds = array<i64: 512, 256>}, {pipeline_mode = #tpu.pipeline_mode<synchronous>, transform_indices = @transform_5, window_bounds = array<i64: 1, 256>}, {pipeline_mode = #tpu.pipeline_mode<synchronous>, transform_indices = @transform_6, window_bounds = array<i64: 128, 512>}, {pipeline_mode = #tpu.pipeline_mode<synchronous>, transform_indices = @transform_7, window_bounds = array<i64: 1, 512>}, {pipeline_mode = #tpu.pipeline_mode<synchronous>, transform_indices = @transform_8, window_bounds = array<i64: 512, 896>}, {pipeline_mode = #tpu.pipeline_mode<synchronous>, transform_indices = @transform_9, window_bounds = array<i64: 1, 896>}, {transform_indices = @transform_10, window_bounds = array<i64: 16, 896>}, {transform_indices = @transform_11, window_bounds = array<i64: 16, 256>}]} {
    %c0 = arith.constant 0 : index
    %c0_0 = arith.constant 0 : index
    %0 = vector.load %arg1[%c0, %c0_0] : memref<16x784xf32, #tpu.memory_space<vmem>>, vector<16x784xf32>
    %1 = arith.truncf %0 : vector<16x784xf32> to vector<16x784xbf16>
    %c0_1 = arith.constant 0 : index
    %c0_2 = arith.constant 0 : index
    %2 = vector.load %arg2[%c0_1, %c0_2] : memref<16x128xf32, #tpu.memory_space<vmem>>, vector<16x128xf32>
    %c0_3 = arith.constant 0 : index
    %c0_4 = arith.constant 0 : index
    %3 = vector.load %arg3[%c0_3, %c0_4] : memref<784x512xbf16, #tpu.memory_space<vmem>>, vector<784x512xbf16>
    %cst = arith.constant dense<0.000000e+00> : vector<16x512xf32>
    %4 = tpu.matmul %1, %3, %cst {dimension_numbers = #tpu.dot_dimension_numbers<[1], [0], [0], [1], [0, 0, 1, 1], [], []>} : vector<16x784xbf16>, vector<784x512xbf16>, vector<16x512xf32> -> vector<16x512xf32>
    %c0_5 = arith.constant 0 : index
    %c0_6 = arith.constant 0 : index
    %5 = vector.load %arg4[%c0_5, %c0_6] : memref<1x512xf32, #tpu.memory_space<vmem>>, vector<1x512xf32>
    %6 = vector.broadcast %5 : vector<1x512xf32> to vector<16x512xf32>
    %7 = arith.addf %4, %6 : vector<16x512xf32>
    %cst_7 = arith.constant 0.000000e+00 : f32
    %8 = vector.broadcast %cst_7 : f32 to vector<16x512xf32>
    %9 = arith.maximumf %7, %8 : vector<16x512xf32>
    %10 = arith.truncf %9 : vector<16x512xf32> to vector<16x512xbf16>
    %c0_8 = arith.constant 0 : index
    %c0_9 = arith.constant 0 : index
    %11 = vector.load %arg5[%c0_8, %c0_9] : memref<512x256xbf16, #tpu.memory_space<vmem>>, vector<512x256xbf16>
    %cst_10 = arith.constant dense<0.000000e+00> : vector<16x256xf32>
    %12 = tpu.matmul %10, %11, %cst_10 {dimension_numbers = #tpu.dot_dimension_numbers<[1], [0], [0], [1], [0, 0, 1, 1], [], []>} : vector<16x512xbf16>, vector<512x256xbf16>, vector<16x256xf32> -> vector<16x256xf32>
    %c0_11 = arith.constant 0 : index
    %c0_12 = arith.constant 0 : index
    %13 = vector.load %arg6[%c0_11, %c0_12] : memref<1x256xf32, #tpu.memory_space<vmem>>, vector<1x256xf32>
    %14 = vector.broadcast %13 : vector<1x256xf32> to vector<16x256xf32>
    %15 = arith.addf %12, %14 : vector<16x256xf32>
    %16 = vector.extract_strided_slice %15 {offsets = [0, 0], sizes = [16, 128], strides = [1, 1]} : vector<16x256xf32> to vector<16x128xf32>
    %17 = vector.extract_strided_slice %15 {offsets = [0, 128], sizes = [16, 128], strides = [1, 1]} : vector<16x256xf32> to vector<16x128xf32>
    %cst_13 = arith.constant 5.000000e-01 : f32
    %18 = vector.broadcast %cst_13 : f32 to vector<16x128xf32>
    %19 = arith.mulf %18, %17 : vector<16x128xf32>
    %20 = math.exp %19 : vector<16x128xf32>
    %21 = arith.mulf %20, %2 : vector<16x128xf32>
    %22 = arith.addf %16, %21 : vector<16x128xf32>
    %23 = arith.truncf %22 : vector<16x128xf32> to vector<16x128xbf16>
    %c0_14 = arith.constant 0 : index
    %c0_15 = arith.constant 0 : index
    %24 = vector.load %arg7[%c0_14, %c0_15] : memref<128x512xbf16, #tpu.memory_space<vmem>>, vector<128x512xbf16>
    %cst_16 = arith.constant dense<0.000000e+00> : vector<16x512xf32>
    %25 = tpu.matmul %23, %24, %cst_16 {dimension_numbers = #tpu.dot_dimension_numbers<[1], [0], [0], [1], [0, 0, 1, 1], [], []>} : vector<16x128xbf16>, vector<128x512xbf16>, vector<16x512xf32> -> vector<16x512xf32>
    %c0_17 = arith.constant 0 : index
    %c0_18 = arith.constant 0 : index
    %26 = vector.load %arg8[%c0_17, %c0_18] : memref<1x512xf32, #tpu.memory_space<vmem>>, vector<1x512xf32>
    %27 = vector.broadcast %26 : vector<1x512xf32> to vector<16x512xf32>
    %28 = arith.addf %25, %27 : vector<16x512xf32>
    %cst_19 = arith.constant 0.000000e+00 : f32
    %29 = vector.broadcast %cst_19 : f32 to vector<16x512xf32>
    %30 = arith.maximumf %28, %29 : vector<16x512xf32>
    %31 = arith.truncf %30 : vector<16x512xf32> to vector<16x512xbf16>
    %c0_20 = arith.constant 0 : index
    %c0_21 = arith.constant 0 : index
    %32 = vector.load %arg9[%c0_20, %c0_21] : memref<512x896xbf16, #tpu.memory_space<vmem>>, vector<512x896xbf16>
    %cst_22 = arith.constant dense<0.000000e+00> : vector<16x896xf32>
    %33 = tpu.matmul %31, %32, %cst_22 {dimension_numbers = #tpu.dot_dimension_numbers<[1], [0], [0], [1], [0, 0, 1, 1], [], []>} : vector<16x512xbf16>, vector<512x896xbf16>, vector<16x896xf32> -> vector<16x896xf32>
    %c0_23 = arith.constant 0 : index
    %c0_24 = arith.constant 0 : index
    %34 = vector.load %arg10[%c0_23, %c0_24] : memref<1x896xf32, #tpu.memory_space<vmem>>, vector<1x896xf32>
    %35 = vector.broadcast %34 : vector<1x896xf32> to vector<16x896xf32>
    %36 = arith.addf %33, %35 : vector<16x896xf32>
    %37 = arith.negf %36 : vector<16x896xf32>
    %38 = math.exp %37 : vector<16x896xf32>
    %cst_25 = arith.constant 1.000000e+00 : f32
    %39 = vector.broadcast %cst_25 : f32 to vector<16x896xf32>
    %40 = arith.addf %39, %38 : vector<16x896xf32>
    %41 = arith.divf %39, %40 : vector<16x896xf32>
    %42 = arith.truncf %41 : vector<16x896xf32> to vector<16x896xbf16>
    %c0_26 = arith.constant 0 : index
    %c0_27 = arith.constant 0 : index
    %43 = vector.load %arg11[%c0_26, %c0_27] : memref<16x896xbf16, #tpu.memory_space<vmem>>, vector<16x896xbf16>
    tpu.vector_store %arg11[%c0_26, %c0_27], %42 {strides = array<i32>} : memref<16x896xbf16, #tpu.memory_space<vmem>>, vector<16x896xbf16>,
    %c0_28 = arith.constant 0 : index
    %c0_29 = arith.constant 0 : index
    %44 = vector.load %arg12[%c0_28, %c0_29] : memref<16x256xf32, #tpu.memory_space<vmem>>, vector<16x256xf32>
    tpu.vector_store %arg12[%c0_28, %c0_29], %15 {strides = array<i32>} : memref<16x256xf32, #tpu.memory_space<vmem>>, vector<16x256xf32>,
    return
  }
  func.func @transform_0(%arg0: i32) -> (i32, i32) {
    %c0_i32 = arith.constant 0 : i32
    %c0_i32_0 = arith.constant 0 : i32
    return %arg0, %c0_i32 : i32, i32
  }
  func.func @transform_1(%arg0: i32) -> (i32, i32) {
    %c0_i32 = arith.constant 0 : i32
    %c0_i32_0 = arith.constant 0 : i32
    return %arg0, %c0_i32 : i32, i32
  }
  func.func @transform_2(%arg0: i32) -> (i32, i32) {
    %c0_i32 = arith.constant 0 : i32
    %c0_i32_0 = arith.constant 0 : i32
    %c0_i32_1 = arith.constant 0 : i32
    return %c0_i32, %c0_i32_0 : i32, i32
  }
  func.func @transform_3(%arg0: i32) -> (i32, i32) {
    %c0_i32 = arith.constant 0 : i32
    %c0_i32_0 = arith.constant 0 : i32
    %c0_i32_1 = arith.constant 0 : i32
    return %c0_i32, %c0_i32_0 : i32, i32
  }
  func.func @transform_4(%arg0: i32) -> (i32, i32) {
    %c0_i32 = arith.constant 0 : i32
    %c0_i32_0 = arith.constant 0 : i32
    %c0_i32_1 = arith.constant 0 : i32
    return %c0_i32, %c0_i32_0 : i32, i32
  }
  func.func @transform_5(%arg0: i32) -> (i32, i32) {
    %c0_i32 = arith.constant 0 : i32
    %c0_i32_0 = arith.constant 0 : i32
    %c0_i32_1 = arith.constant 0 : i32
    return %c0_i32, %c0_i32_0 : i32, i32
  }
  func.func @transform_6(%arg0: i32) -> (i32, i32) {
    %c0_i32 = arith.constant 0 : i32
    %c0_i32_0 = arith.constant 0 : i32
    %c0_i32_1 = arith.constant 0 : i32
    return %c0_i32, %c0_i32_0 : i32, i32
  }
  func.func @transform_7(%arg0: i32) -> (i32, i32) {
    %c0_i32 = arith.constant 0 : i32
    %c0_i32_0 = arith.constant 0 : i32
    %c0_i32_1 = arith.constant 0 : i32
    return %c0_i32, %c0_i32_0 : i32, i32
  }
  func.func @transform_8(%arg0: i32) -> (i32, i32) {
    %c0_i32 = arith.constant 0 : i32
    %c0_i32_0 = arith.constant 0 : i32
    %c0_i32_1 = arith.constant 0 : i32
    return %c0_i32, %c0_i32_0 : i32, i32
  }
  func.func @transform_9(%arg0: i32) -> (i32, i32) {
    %c0_i32 = arith.constant 0 : i32
    %c0_i32_0 = arith.constant 0 : i32
    %c0_i32_1 = arith.constant 0 : i32
    return %c0_i32, %c0_i32_0 : i32, i32
  }
  func.func @transform_10(%arg0: i32) -> (i32, i32) {
    %c0_i32 = arith.constant 0 : i32
    %c0_i32_0 = arith.constant 0 : i32
    return %arg0, %c0_i32 : i32, i32
  }
  func.func @transform_11(%arg0: i32) -> (i32, i32) {
    %c0_i32 = arith.constant 0 : i32
    %c0_i32_0 = arith.constant 0 : i32
    return %arg0, %c0_i32 : i32, i32
  }
}

</mosaic_0001>

<bundles_post_ra>
// kernel: vae_forward.1
= control target key start
LH: loop header
LB: loop body
LE: loop exit
PB: predicated region body
PF: predicated region fallthrough
CT: control target
= control target key end

     0   :  { %vm1259_vm0 = vcmask 130048   ;;  %s7614_s2 = inlined_call_operand.vmem [shape: bf16[784,512], index: 2, kind: input, shape index: {}]   ;;  %s7615_s0 = inlined_call_operand.vmem [shape: f32[16,784], index: 0, kind: input, shape index: {}]   ;;  %s7616_s4 = inlined_call_operand.vmem [shape: bf16[512,256], index: 4, kind: input, shape index: {}]   ;;  %s7617_s6 = inlined_call_operand.vmem [shape: bf16[128,512], index: 6, kind: input, shape index: {}]   ;;  %s7618_s3 = inlined_call_operand.vmem [shape: f32[1,512], index: 3, kind: input, shape index: {}]   ;;  %s7619_s8 = inlined_call_operand.vmem [shape: bf16[512,896], index: 8, kind: input, shape index: {}]   ;;  %s7620_s5 = inlined_call_operand.vmem [shape: f32[1,256], index: 5, kind: input, shape index: {}]   ;;  %s7621_s11 = inlined_call_operand.vmem [shape: f32[16,256], index: 11, kind: output, shape index: {1}]   ;;  %s7622_s1 = inlined_call_operand.vmem [shape: f32[16,128], index: 1, kind: input, shape index: {}]   ;;  %s7623_s7 = inlined_call_operand.vmem [shape: f32[1,512], index: 7, kind: input, shape index: {}]   ;;  %s7624_s9 = inlined_call_operand.vmem [shape: f32[1,896], index: 9, kind: input, shape index: {}]   ;;  %s7625_s10 = inlined_call_operand.vmem [shape: bf16[16,896], index: 10, kind: output, shape index: {0}]  }
   0x1   :  { %v5014_v0 = vld [vmem:[%s7614_s2 + $0x4] ss:$16 sps:$4 sm:$0xff]   ;;  %v5016_v1 = vld [vmem:[%s7614_s2 + $0xc] ss:$16 sps:$4 sm:$0xff]   ;;  %v5018_v2 = vld [vmem:[%s7614_s2] ss:$16 sps:$4 sm:$0xff]  }
   0x2   :  { %1263 = vmatprep.subr.bf16.mxu0 %v5014_v0  ;;  %v5019_v3 = vld [vmem:[%s7614_s2 + $0x8] ss:$16 sps:$4 sm:$0xff]   ;;  %1435 = vmatprep.subr.bf16.mxu1 %v5016_v1  ;;  %v5020_v4 = vld [vmem:[%s7614_s2 + $0x24] ss:$16 sps:$4 sm:$0xff]   ;;  %v5022_v5 = vld [vmem:[%s7614_s2 + $0x2c] ss:$16 sps:$4 sm:$0xff]  }
   0x3   :  { %1264 = vmatpush1.bf16.msra.mxu0 %v5018_v2  ;;  %1436 = vmatpush1.bf16.msra.mxu1 %v5019_v3  ;;  %v5024_v6 = vld [vmem:[%s7614_s2 + $0x20] ss:$16 sps:$4 sm:$0xff]   ;;  %v5025_v7 = vld [vmem:[%s7614_s2 + $0x28] ss:$16 sps:$4 sm:$0xff]   ;;  %v5026_v8 = vld [vmem:[%s7614_s2 + $0x44] ss:$16 sps:$4 sm:$0xff]  }
   0x4   :  { %1265 = vmatprep.subr.bf16.mxu0 %v5020_v4  ;;  %1437 = vmatprep.subr.bf16.mxu1 %v5022_v5  ;;  %v5028_v9 = vld [vmem:[%s7614_s2 + $0x4c] ss:$16 sps:$4 sm:$0xff]   ;;  %v5030_v10 = vld [vmem:[%s7614_s2 + $0x40] ss:$16 sps:$4 sm:$0xff]   ;;  %v5031_v11 = vld [vmem:[%s7614_s2 + $0x48] ss:$16 sps:$4 sm:$0xff]  }
   0x5   :  { %v5032_v12 = vld [vmem:[%s7614_s2 + $0x64] ss:$16 sps:$4 sm:$0xff]   ;;  %v5034_v13 = vld [vmem:[%s7614_s2 + $0x6c] ss:$16 sps:$4 sm:$0xff]   ;;  %v5036_v14 = vld [vmem:[%s7614_s2 + $0x60] ss:$16 sps:$4 sm:$0xff]  }
   0x6   :  { %v5037_v15 = vld [vmem:[%s7614_s2 + $0x68] ss:$16 sps:$4 sm:$0xff]   ;;  %v5038_v16 = vld [vmem:[%s7614_s2 + $0x84] ss:$16 sps:$4 sm:$0xff]   ;;  %v5040_v17 = vld [vmem:[%s7614_s2 + $0x8c] ss:$16 sps:$4 sm:$0xff]  }
   0x7   :  { %1266 = vmatpush1.bf16.msra.mxu0 %v5024_v6  ;;  %1438 = vmatpush1.bf16.msra.mxu1 %v5025_v7  ;;  %v5042_v18 = vld [vmem:[%s7614_s2 + $0x80] ss:$16 sps:$4 sm:$0xff]   ;;  %v5043_v19 = vld [vmem:[%s7614_s2 + $0x88] ss:$16 sps:$4 sm:$0xff]   ;;  %v5044_v20 = vld [vmem:[%s7614_s2 + $0xa4] ss:$16 sps:$4 sm:$0xff]  }
   0x8   :  { %1267 = vmatprep.subr.bf16.mxu0 %v5026_v8  ;;  %1439 = vmatprep.subr.bf16.mxu1 %v5028_v9  ;;  %v5046_v21 = vld [vmem:[%s7614_s2 + $0xac] ss:$16 sps:$4 sm:$0xff]   ;;  %v5048_v22 = vld [vmem:[%s7614_s2 + $0xa0] ss:$16 sps:$4 sm:$0xff]   ;;  %v5049_v23 = vld [vmem:[%s7614_s2 + $0xa8] ss:$16 sps:$4 sm:$0xff]  }
   0x9   :  { %v5050_v24 = vld [vmem:[%s7614_s2 + $0xc4] ss:$16 sps:$4 sm:$0xff]   ;;  %v5052_v25 = vld [vmem:[%s7614_s2 + $0xcc] ss:$16 sps:$4 sm:$0xff]   ;;  %v5054_v26 = vld [vmem:[%s7614_s2 + $0xc0] ss:$16 sps:$4 sm:$0xff]  }
   0xa   :  { %v5055_v27 = vld [vmem:[%s7614_s2 + $0xc8] ss:$16 sps:$4 sm:$0xff]   ;;  %v5056_v28 = vld [vmem:[%s7614_s2 + $0xe4] ss:$16 sps:$4 sm:$0xff]   ;;  %v5058_v29 = vld [vmem:[%s7614_s2 + $0xec] ss:$16 sps:$4 sm:$0xff]  }
   0xb   :  { %1268 = vmatpush1.bf16.msra.mxu0 %v5030_v10  ;;  %1440 = vmatpush1.bf16.msra.mxu1 %v5031_v11  ;;  %v5060_v30 = vld [vmem:[%s7614_s2 + $0xe0] ss:$16 sps:$4 sm:$0xff]   ;;  %v5061_v31 = vld [vmem:[%s7614_s2 + $0xe8] ss:$16 sps:$4 sm:$0xff]   ;;  %v5062_v32 = vld [vmem:[%s7614_s2 + $0x104] ss:$16 sps:$4 sm:$0xff]  }
   0xc   :  { %1269 = vmatprep.subr.bf16.mxu0 %v5032_v12  ;;  %1441 = vmatprep.subr.bf16.mxu1 %v5034_v13  ;;  %v5064_v33 = vld [vmem:[%s7614_s2 + $0x10c] ss:$16 sps:$4 sm:$0xff]   ;;  %v5066_v34 = vld [vmem:[%s7614_s2 + $0x100] ss:$16 sps:$4 sm:$0xff]   ;;  %v5067_v35 = vld [vmem:[%s7614_s2 + $0x108] ss:$16 sps:$4 sm:$0xff]  }
   0xd   :  { %v5068_v36 = vld [vmem:[%s7614_s2 + $0x124] ss:$16 sps:$4 sm:$0xff]   ;;  %v5070_v37 = vld [vmem:[%s7614_s2 + $0x12c] ss:$16 sps:$4 sm:$0xff]   ;;  %v5072_v38 = vld [vmem:[%s7614_s2 + $0x120] ss:$16 sps:$4 sm:$0xff]  }
   0xe   :  { %v5073_v39 = vld [vmem:[%s7614_s2 + $0x128] ss:$16 sps:$4 sm:$0xff]   ;;  %v5074_v40 = vld [vmem:[%s7614_s2 + $0x144] ss:$16 sps:$4 sm:$0xff]   ;;  %v5076_v41 = vld [vmem:[%s7614_s2 + $0x14c] ss:$16 sps:$4 sm:$0xff]  }
   0xf   :  { %1270 = vmatpush1.bf16.msra.mxu0 %v5036_v14  ;;  %1442 = vmatpush1.bf16.msra.mxu1 %v5037_v15  ;;  %v5078_v42 = vld [vmem:[%s7614_s2 + $0x140] ss:$16 sps:$4 sm:$0xff]   ;;  %v5079_v43 = vld [vmem:[%s7614_s2 + $0x148] ss:$16 sps:$4 sm:$0xff]   ;;  %v5080_v44 = vld [vmem:[%s7614_s2 + $0x164] ss:$16 sps:$4 sm:$0xff]  }
  0x10   :  { %1271 = vmatprep.subr.bf16.mxu0 %v5038_v16  ;;  %1443 = vmatprep.subr.bf16.mxu1 %v5040_v17  ;;  %v5082_v45 = vld [vmem:[%s7614_s2 + $0x16c] ss:$16 sps:$4 sm:$0xff]   ;;  %v46_v47 = vld [vmem:[%s7615_s0 + $0x40] sm:$0xff]  ;;  %v5085_v49 = vld [vmem:[%s7614_s2 + $0x168] ss:$16 sps:$4 sm:$0xff]  }
  0x11   :  { %v39_v46 = vld [vmem:[%s7615_s0 + $0x8] sm:$0xff]  ;;  %v5084_v48 = vld [vmem:[%s7614_s2 + $0x160] ss:$16 sps:$4 sm:$0xff]   ;;  %v5086_v51 = vld [vmem:[%s7614_s2 + $0x184] ss:$16 sps:$4 sm:$0xff]  }
  0x12   :  { %v53_v50 = vpack.c.bf16 %v46_v47, %v39_v46  ;;  %v5088_v52 = vld [vmem:[%s7614_s2 + $0x18c] ss:$16 sps:$4 sm:$0xff]   ;;  %v5090_v53 = vld [vmem:[%s7614_s2 + $0x180] ss:$16 sps:$4 sm:$0xff]   ;;  %v5091_v54 = vld [vmem:[%s7614_s2 + $0x188] ss:$16 sps:$4 sm:$0xff]  }
  0x13   :  { %1272 = vmatpush1.bf16.msra.mxu0 %v5042_v18  ;;  %1444 = vmatpush1.bf16.msra.mxu1 %v5043_v19  ;;  %v5092_v55 = vld [vmem:[%s7614_s2 + $0x1a4] ss:$16 sps:$4 sm:$0xff]   ;;  %v5094_v56 = vld [vmem:[%s7614_s2 + $0x1ac] ss:$16 sps:$4 sm:$0xff]   ;;  %v5096_v57 = vld [vmem:[%s7614_s2 + $0x1a0] ss:$16 sps:$4 sm:$0xff]  }
  0x14   :  { %1273 = vmatprep.subr.bf16.mxu0 %v5044_v20  ;;  %1445 = vmatprep.subr.bf16.mxu1 %v5046_v21  ;;  %v5097_v58 = vld [vmem:[%s7614_s2 + $0x1a8] ss:$16 sps:$4 sm:$0xff]   ;;  %v5098_v59 = vld [vmem:[%s7614_s2 + $0x1c4] ss:$16 sps:$4 sm:$0xff]   ;;  %v5100_v60 = vld [vmem:[%s7614_s2 + $0x1cc] ss:$16 sps:$4 sm:$0xff]  }
  0x15   :  { %1295 = vmatprep.mubr.bf16.mxu0 %v53_v50  ;;  %1467 = vmatprep.mubr.bf16.mxu1 %v53_v50  ;;  %v5102_v61 = vld [vmem:[%s7614_s2 + $0x1c0] ss:$16 sps:$4 sm:$0xff]   ;;  %v5103_v62 = vld [vmem:[%s7614_s2 + $0x1c8] ss:$16 sps:$4 sm:$0xff]   ;;  %v5104_v63 = vld [vmem:[%s7614_s2 + $0x1e4] ss:$16 sps:$4 sm:$0xff]  }
  0x16   :  { %v5106_v0 = vld [vmem:[%s7614_s2 + $0x1ec] ss:$16 sps:$4 sm:$0xff]   ;;  %v5108_v1 = vld [vmem:[%s7614_s2 + $0x1e0] ss:$16 sps:$4 sm:$0xff]   ;;  %v5109_v2 = vld [vmem:[%s7614_s2 + $0x1e8] ss:$16 sps:$4 sm:$0xff]  }
  0x17   :  { %1274 = vmatpush1.bf16.msra.mxu0 %v5048_v22  ;;  %1446 = vmatpush1.bf16.msra.mxu1 %v5049_v23  ;;  %v5112_v3 = vld [vmem:[%s7614_s2 + $0x204] ss:$16 sps:$4 sm:$0xff]   ;;  %v45_v5 = vld [vmem:[%s7615_s0 + $0x38] sm:$0xff]  ;;  %v5110_v7 = vld [vmem:[%s7614_s2 + $0x200] ss:$16 sps:$4 sm:$0xff]  }
  0x18   :  { %1275 = vmatprep.subr.bf16.mxu0 %v5050_v24  ;;  %1447 = vmatprep.subr.bf16.mxu1 %v5052_v25  ;;  %v38_v4 = vld [vmem:[%s7615_s0] sm:$0xff]  ;;  %v5115_v6 = vld [vmem:[%s7614_s2 + $0x20c] ss:$16 sps:$4 sm:$0xff]   ;;  %v5113_v8 = vld [vmem:[%s7614_s2 + $0x208] ss:$16 sps:$4 sm:$0xff]  }
  0x19   :  { %v52_v9 = vpack.c.bf16 %v45_v5, %v38_v4  ;;  %v5118_v10 = vld [vmem:[%s7614_s2 + $0x224] ss:$16 sps:$4 sm:$0xff]   ;;  %v5121_v11 = vld [vmem:[%s7614_s2 + $0x22c] ss:$16 sps:$4 sm:$0xff]   ;;  %v5116_v12 = vld [vmem:[%s7614_s2 + $0x220] ss:$16 sps:$4 sm:$0xff]  }
  0x1a   :  { %v5119_v13 = vld [vmem:[%s7614_s2 + $0x228] ss:$16 sps:$4 sm:$0xff]   ;;  %v5124_v14 = vld [vmem:[%s7614_s2 + $0x244] ss:$16 sps:$4 sm:$0xff]   ;;  %v5127_v15 = vld [vmem:[%s7614_s2 + $0x24c] ss:$16 sps:$4 sm:$0xff]  }
  0x1b   :  { %1276 = vmatpush1.bf16.msra.mxu0 %v5054_v26  ;;  %1448 = vmatpush1.bf16.msra.mxu1 %v5055_v27  ;;  %v5122_v16 = vld [vmem:[%s7614_s2 + $0x240] ss:$16 sps:$4 sm:$0xff]   ;;  %v5125_v17 = vld [vmem:[%s7614_s2 + $0x248] ss:$16 sps:$4 sm:$0xff]   ;;  %v5130_v18 = vld [vmem:[%s7614_s2 + $0x264] ss:$16 sps:$4 sm:$0xff]  }
  0x1c   :  { %1277 = vmatprep.subr.bf16.mxu0 %v5056_v28  ;;  %1449 = vmatprep.subr.bf16.mxu1 %v5058_v29  ;;  %v5133_v19 = vld [vmem:[%s7614_s2 + $0x26c] ss:$16 sps:$4 sm:$0xff]   ;;  %v5128_v20 = vld [vmem:[%s7614_s2 + $0x260] ss:$16 sps:$4 sm:$0xff]   ;;  %v5131_v21 = vld [vmem:[%s7614_s2 + $0x268] ss:$16 sps:$4 sm:$0xff]  }
  0x1d   :  { %v5136_v22 = vld [vmem:[%s7614_s2 + $0x284] ss:$16 sps:$4 sm:$0xff]   ;;  %v5139_v23 = vld [vmem:[%s7614_s2 + $0x28c] ss:$16 sps:$4 sm:$0xff]   ;;  %v5134_v24 = vld [vmem:[%s7614_s2 + $0x280] ss:$16 sps:$4 sm:$0xff]  }
  0x1e   :  { %v5137_v25 = vld [vmem:[%s7614_s2 + $0x288] ss:$16 sps:$4 sm:$0xff]   ;;  %v5142_v26 = vld [vmem:[%s7614_s2 + $0x2a4] ss:$16 sps:$4 sm:$0xff]   ;;  %v5145_v27 = vld [vmem:[%s7614_s2 + $0x2ac] ss:$16 sps:$4 sm:$0xff]  }
  0x1f   :  { %1278 = vmatpush1.bf16.msra.mxu0 %v5060_v30  ;;  %1450 = vmatpush1.bf16.msra.mxu1 %v5061_v31  ;;  %v5140_v28 = vld [vmem:[%s7614_s2 + $0x2a0] ss:$16 sps:$4 sm:$0xff]   ;;  %v5143_v29 = vld [vmem:[%s7614_s2 + $0x2a8] ss:$16 sps:$4 sm:$0xff]   ;;  %v5148_v30 = vld [vmem:[%s7614_s2 + $0x2c4] ss:$16 sps:$4 sm:$0xff]  }
  0x20   :  { %1279 = vmatprep.subr.bf16.mxu0 %v5062_v32  ;;  %1451 = vmatprep.subr.bf16.mxu1 %v5064_v33  ;;  %v5151_v31 = vld [vmem:[%s7614_s2 + $0x2cc] ss:$16 sps:$4 sm:$0xff]   ;;  %v48_v33 = vld [vmem:[%s7615_s0 + $0x50] sm:$0xff]  ;;  %v5197_v4 = vld [vmem:[%s7614_s2 + $0x3c8] ss:$16 sps:$4 sm:$0xff]  }
  0x21   :  { %v41_v32 = vld [vmem:[%s7615_s0 + $0x18] sm:$0xff]  ;;  %v5164_v47 = vld [vmem:[%s7614_s2 + $0x320] ss:$16 sps:$4 sm:$0xff]   ;;  %v5202_v5 = vld [vmem:[%s7614_s2 + $0x3e4] ss:$16 sps:$4 sm:$0xff]  }
  0x22   :  { %v5169_v46 = vld [vmem:[%s7614_s2 + $0x32c] ss:$16 sps:$4 sm:$0xff]  }
  0x23   :  { %1280 = vmatpush1.bf16.msra.mxu0 %v5066_v34  ;;  %1452 = vmatpush1.bf16.msra.mxu1 %v5067_v35  ;;  %v5146_v34 = vld [vmem:[%s7614_s2 + $0x2c0] ss:$16 sps:$4 sm:$0xff]   ;;  %v5149_v35 = vld [vmem:[%s7614_s2 + $0x2c8] ss:$16 sps:$4 sm:$0xff]   ;;  %v5175_v50 = vld [vmem:[%s7614_s2 + $0x34c] ss:$16 sps:$4 sm:$0xff]  }
  0x24   :  { %1281 = vmatprep.subr.bf16.mxu0 %v5068_v36  ;;  %1453 = vmatprep.subr.bf16.mxu1 %v5070_v37  ;;  %v55_v36 = vpack.c.bf16 %v48_v33, %v41_v32  ;;  %v5154_v37 = vld [vmem:[%s7614_s2 + $0x2e4] ss:$16 sps:$4 sm:$0xff]   ;;  %v5235_v32 = vld [vmem:[%s7614_s2 + $0x48c] ss:$16 sps:$4 sm:$0xff]   ;;  %v5230_v33 = vld [vmem:[%s7614_s2 + $0x480] ss:$16 sps:$4 sm:$0xff]  }
  0x27   :  { %1282 = vmatpush1.bf16.msra.mxu0 %v5072_v38  ;;  %1454 = vmatpush1.bf16.msra.mxu1 %v5073_v39  ;;  %v5157_v38 = vld [vmem:[%s7614_s2 + $0x2ec] ss:$16 sps:$4 sm:$0xff]   ;;  %v5152_v39 = vld [vmem:[%s7614_s2 + $0x2e0] ss:$16 sps:$4 sm:$0xff]  }
  0x28   :  { %1283 = vmatprep.subr.bf16.mxu0 %v5074_v40  ;;  %1455 = vmatprep.subr.bf16.mxu1 %v5076_v41  ;;  %v5155_v40 = vld [vmem:[%s7614_s2 + $0x2e8] ss:$16 sps:$4 sm:$0xff]   ;;  %v5160_v41 = vld [vmem:[%s7614_s2 + $0x304] ss:$16 sps:$4 sm:$0xff]  }
  0x2b   :  { %1284 = vmatpush1.bf16.msra.mxu0 %v5078_v42  ;;  %1456 = vmatpush1.bf16.msra.mxu1 %v5079_v43  ;;  %v5163_v42 = vld [vmem:[%s7614_s2 + $0x30c] ss:$16 sps:$4 sm:$0xff]   ;;  %v5158_v43 = vld [vmem:[%s7614_s2 + $0x300] ss:$16 sps:$4 sm:$0xff]  }
  0x2c   :  { %1285 = vmatprep.subr.bf16.mxu0 %v5080_v44  ;;  %1457 = vmatprep.subr.bf16.mxu1 %v5082_v45  ;;  %v5161_v44 = vld [vmem:[%s7614_s2 + $0x308] ss:$16 sps:$4 sm:$0xff]   ;;  %v5166_v45 = vld [vmem:[%s7614_s2 + $0x324] ss:$16 sps:$4 sm:$0xff]  }
  0x2f   :  { %1286 = vmatpush1.bf16.msra.mxu0 %v5084_v48  ;;  %1458 = vmatpush1.bf16.msra.mxu1 %v5085_v49  ;;  %v5167_v48 = vld [vmem:[%s7614_s2 + $0x328] ss:$16 sps:$4 sm:$0xff]   ;;  %v5172_v49 = vld [vmem:[%s7614_s2 + $0x344] ss:$16 sps:$4 sm:$0xff]  }
  0x30   :  { %1287 = vmatprep.subr.bf16.mxu0 %v5086_v51  ;;  %1459 = vmatprep.subr.bf16.mxu1 %v5088_v52  ;;  %v5170_v51 = vld [vmem:[%s7614_s2 + $0x340] ss:$16 sps:$4 sm:$0xff]   ;;  %v5173_v52 = vld [vmem:[%s7614_s2 + $0x348] ss:$16 sps:$4 sm:$0xff]  }
  0x33   :  { %1288 = vmatpush1.bf16.msra.mxu0 %v5090_v53  ;;  %1460 = vmatpush1.bf16.msra.mxu1 %v5091_v54  ;;  %v5178_v53 = vld [vmem:[%s7614_s2 + $0x364] ss:$16 sps:$4 sm:$0xff]   ;;  %v5181_v54 = vld [vmem:[%s7614_s2 + $0x36c] ss:$16 sps:$4 sm:$0xff]  }
  0x34   :  { %1289 = vmatprep.subr.bf16.mxu0 %v5092_v55  ;;  %1461 = vmatprep.subr.bf16.mxu1 %v5094_v56  ;;  %v5176_v55 = vld [vmem:[%s7614_s2 + $0x360] ss:$16 sps:$4 sm:$0xff]   ;;  %v5179_v56 = vld [vmem:[%s7614_s2 + $0x368] ss:$16 sps:$4 sm:$0xff]  }
  0x37   :  { %1290 = vmatpush1.bf16.msra.mxu0 %v5096_v57  ;;  %1462 = vmatpush1.bf16.msra.mxu1 %v5097_v58  ;;  %v5184_v57 = vld [vmem:[%s7614_s2 + $0x384] ss:$16 sps:$4 sm:$0xff]   ;;  %v5187_v58 = vld [vmem:[%s7614_s2 + $0x38c] ss:$16 sps:$4 sm:$0xff]  }
  0x38   :  { %1291 = vmatprep.subr.bf16.mxu0 %v5098_v59  ;;  %1463 = vmatprep.subr.bf16.mxu1 %v5100_v60  ;;  %v5182_v59 = vld [vmem:[%s7614_s2 + $0x380] ss:$16 sps:$4 sm:$0xff]   ;;  %v5185_v60 = vld [vmem:[%s7614_s2 + $0x388] ss:$16 sps:$4 sm:$0xff]  }
  0x3b   :  { %1292 = vmatpush1.bf16.msra.mxu0 %v5102_v61  ;;  %1464 = vmatpush1.bf16.msra.mxu1 %v5103_v62  ;;  %v5190_v61 = vld [vmem:[%s7614_s2 + $0x3a4] ss:$16 sps:$4 sm:$0xff]   ;;  %v5193_v62 = vld [vmem:[%s7614_s2 + $0x3ac] ss:$16 sps:$4 sm:$0xff]  }
  0x3c   :  { %1293 = vmatprep.subr.bf16.mxu0 %v5104_v63  ;;  %1465 = vmatprep.subr.bf16.mxu1 %v5106_v0  ;;  %v5188_v63 = vld [vmem:[%s7614_s2 + $0x3a0] ss:$16 sps:$4 sm:$0xff]   ;;  %v5191_v0 = vld [vmem:[%s7614_s2 + $0x3a8] ss:$16 sps:$4 sm:$0xff]  }
  0x3f   :  { %1294 = vmatpush1.bf16.msra.mxu0 %v5108_v1  ;;  %1466 = vmatpush1.bf16.msra.mxu1 %v5109_v2  ;;  %v5196_v1 = vld [vmem:[%s7614_s2 + $0x3c4] ss:$16 sps:$4 sm:$0xff]   ;;  %v5199_v2 = vld [vmem:[%s7614_s2 + $0x3cc] ss:$16 sps:$4 sm:$0xff]  }
  0x40   :  { %1306 = vmatprep.subr.bf16.mxu0 %v5112_v3  ;;  %1478 = vmatprep.subr.bf16.mxu1 %v5115_v6  ;;  %v5194_v3 = vld [vmem:[%s7614_s2 + $0x3c0] ss:$16 sps:$4 sm:$0xff]   ;;  %v5205_v6 = vld [vmem:[%s7614_s2 + $0x3ec] ss:$16 sps:$4 sm:$0xff]  }
  0x42   :  { %1296 = vmatmul.mubr.bf16.vlgmr.msra.gmra.mrb[0].mxu0 %v52_v9  ;;  %1468 = vmatmul.mubr.bf16.vlgmr.msra.gmra.mrb[0].mxu1 %v52_v9  ;;  %v5208_v9 = vld [vmem:[%s7614_s2 + $0x404] ss:$16 sps:$4 sm:$0xff]  }
  0x43   :  { %1307 = vmatpush1.bf16.msra.mxu0 %v5110_v7  ;;  %1479 = vmatpush1.bf16.msra.mxu1 %v5113_v8  ;;  %v5200_v7 = vld [vmem:[%s7614_s2 + $0x3e0] ss:$16 sps:$4 sm:$0xff]   ;;  %v5203_v8 = vld [vmem:[%s7614_s2 + $0x3e8] ss:$16 sps:$4 sm:$0xff]  }
  0x44   :  { %1308 = vmatprep.subr.bf16.mxu0 %v5118_v10  ;;  %1480 = vmatprep.subr.bf16.mxu1 %v5121_v11  ;;  %v40_v10 = vld [vmem:[%s7615_s0 + $0x10] sm:$0xff]  ;;  %v47_v11 = vld [vmem:[%s7615_s0 + $0x48] sm:$0xff] }
  0x45   :  { %1338 = vmatprep.mubr.bf16.mxu0 %v55_v36  ;;  %1510 = vmatprep.mubr.bf16.mxu1 %v55_v36  ;;  %v5241_v36 = vld [vmem:[%s7614_s2 + $0x4ac] ss:$16 sps:$4 sm:$0xff]  }
  0x47   :  { %1309 = vmatpush1.bf16.msra.mxu0 %v5116_v12  ;;  %1481 = vmatpush1.bf16.msra.mxu1 %v5119_v13  ;;  %v5211_v12 = vld [vmem:[%s7614_s2 + $0x40c] ss:$16 sps:$4 sm:$0xff]   ;;  %v5206_v13 = vld [vmem:[%s7614_s2 + $0x400] ss:$16 sps:$4 sm:$0xff]  }
  0x48   :  { %1310 = vmatprep.subr.bf16.mxu0 %v5124_v14  ;;  %1482 = vmatprep.subr.bf16.mxu1 %v5127_v15  ;;  %v5209_v14 = vld [vmem:[%s7614_s2 + $0x408] ss:$16 sps:$4 sm:$0xff]   ;;  %v54_v15 = vpack.c.bf16 %v47_v11, %v40_v10  ;;  %v5298_v11 = vld [vmem:[%s7614_s2 + $0x5e4] ss:$16 sps:$4 sm:$0xff]  }
  0x49   :  { %v5293_v10 = vld [vmem:[%s7614_s2 + $0x5c8] ss:$16 sps:$4 sm:$0xff]  }
  0x4b   :  { %1311 = vmatpush1.bf16.msra.mxu0 %v5122_v16  ;;  %1483 = vmatpush1.bf16.msra.mxu1 %v5125_v17  ;;  %v5214_v16 = vld [vmem:[%s7614_s2 + $0x424] ss:$16 sps:$4 sm:$0xff]   ;;  %v5217_v17 = vld [vmem:[%s7614_s2 + $0x42c] ss:$16 sps:$4 sm:$0xff]  }
  0x4c   :  { %1312 = vmatprep.subr.bf16.mxu0 %v5130_v18  ;;  %1484 = vmatprep.subr.bf16.mxu1 %v5133_v19  ;;  %v43_v18 = vld [vmem:[%s7615_s0 + $0x28] sm:$0xff]  ;;  %v5212_v19 = vld [vmem:[%s7614_s2 + $0x420] ss:$16 sps:$4 sm:$0xff]  }
  0x4f   :  { %1313 = vmatpush1.bf16.msra.mxu0 %v5128_v20  ;;  %1485 = vmatpush1.bf16.msra.mxu1 %v5131_v21  ;;  %v5215_v20 = vld [vmem:[%s7614_s2 + $0x428] ss:$16 sps:$4 sm:$0xff]   ;;  %v50_v21 = vld [vmem:[%s7615_s0 + $0x60] sm:$0xff] }
  0x50   :  { %1314 = vmatprep.subr.bf16.mxu0 %v5136_v22  ;;  %1486 = vmatprep.subr.bf16.mxu1 %v5139_v23  ;;  %v5220_v22 = vld [vmem:[%s7614_s2 + $0x444] ss:$16 sps:$4 sm:$0xff]   ;;  %v57_v23 = vpack.c.bf16 %v50_v21, %v43_v18  ;;  %v5307_v18 = vld [vmem:[%s7614_s2 + $0x60c] ss:$16 sps:$4 sm:$0xff]   ;;  %v5305_v21 = vld [vmem:[%s7614_s2 + $0x608] ss:$16 sps:$4 sm:$0xff]  }
  0x53   :  { %1315 = vmatpush1.bf16.msra.mxu0 %v5134_v24  ;;  %1487 = vmatpush1.bf16.msra.mxu1 %v5137_v25  ;;  %v5223_v24 = vld [vmem:[%s7614_s2 + $0x44c] ss:$16 sps:$4 sm:$0xff]   ;;  %v5218_v25 = vld [vmem:[%s7614_s2 + $0x440] ss:$16 sps:$4 sm:$0xff]  }
  0x54   :  { %1316 = vmatprep.subr.bf16.mxu0 %v5142_v26  ;;  %1488 = vmatprep.subr.bf16.mxu1 %v5145_v27  ;;  %v5221_v26 = vld [vmem:[%s7614_s2 + $0x448] ss:$16 sps:$4 sm:$0xff]   ;;  %v5226_v27 = vld [vmem:[%s7614_s2 + $0x464] ss:$16 sps:$4 sm:$0xff]  }
  0x57   :  { %1317 = vmatpush1.bf16.msra.mxu0 %v5140_v28  ;;  %1489 = vmatpush1.bf16.msra.mxu1 %v5143_v29  ;;  %v5229_v28 = vld [vmem:[%s7614_s2 + $0x46c] ss:$16 sps:$4 sm:$0xff]   ;;  %v5224_v29 = vld [vmem:[%s7614_s2 + $0x460] ss:$16 sps:$4 sm:$0xff]  }
  0x58   :  { %1318 = vmatprep.subr.bf16.mxu0 %v5148_v30  ;;  %1490 = vmatprep.subr.bf16.mxu1 %v5151_v31  ;;  %v5227_v30 = vld [vmem:[%s7614_s2 + $0x468] ss:$16 sps:$4 sm:$0xff]   ;;  %v5232_v31 = vld [vmem:[%s7614_s2 + $0x484] ss:$16 sps:$4 sm:$0xff]  }
  0x5b   :  { %1319 = vmatpush1.bf16.msra.mxu0 %v5146_v34  ;;  %1491 = vmatpush1.bf16.msra.mxu1 %v5149_v35  ;;  %v5233_v34 = vld [vmem:[%s7614_s2 + $0x488] ss:$16 sps:$4 sm:$0xff]   ;;  %v5238_v35 = vld [vmem:[%s7614_s2 + $0x4a4] ss:$16 sps:$4 sm:$0xff]  }
  0x5c   :  { %1320 = vmatprep.subr.bf16.mxu0 %v5154_v37  ;;  %1492 = vmatprep.subr.bf16.mxu1 %v5157_v38  ;;  %v5236_v37 = vld [vmem:[%s7614_s2 + $0x4a0] ss:$16 sps:$4 sm:$0xff]   ;;  %v5239_v38 = vld [vmem:[%s7614_s2 + $0x4a8] ss:$16 sps:$4 sm:$0xff]  }
  0x5f   :  { %1321 = vmatpush1.bf16.msra.mxu0 %v5152_v39  ;;  %1493 = vmatpush1.bf16.msra.mxu1 %v5155_v40  ;;  %v5244_v39 = vld [vmem:[%s7614_s2 + $0x4c4] ss:$16 sps:$4 sm:$0xff]   ;;  %v5247_v40 = vld [vmem:[%s7614_s2 + $0x4cc] ss:$16 sps:$4 sm:$0xff]  }
  0x60   :  { %1322 = vmatprep.subr.bf16.mxu0 %v5160_v41  ;;  %1494 = vmatprep.subr.bf16.mxu1 %v5163_v42  ;;  %v5242_v41 = vld [vmem:[%s7614_s2 + $0x4c0] ss:$16 sps:$4 sm:$0xff]   ;;  %v5245_v42 = vld [vmem:[%s7614_s2 + $0x4c8] ss:$16 sps:$4 sm:$0xff]  }
  0x63   :  { %1323 = vmatpush1.bf16.msra.mxu0 %v5158_v43  ;;  %1495 = vmatpush1.bf16.msra.mxu1 %v5161_v44  ;;  %v5250_v43 = vld [vmem:[%s7614_s2 + $0x4e4] ss:$16 sps:$4 sm:$0xff]   ;;  %v5253_v44 = vld [vmem:[%s7614_s2 + $0x4ec] ss:$16 sps:$4 sm:$0xff]  }
  0x64   :  { %1324 = vmatprep.subr.bf16.mxu0 %v5166_v45  ;;  %1496 = vmatprep.subr.bf16.mxu1 %v5169_v46  ;;  %v5248_v45 = vld [vmem:[%s7614_s2 + $0x4e0] ss:$16 sps:$4 sm:$0xff]   ;;  %v5251_v46 = vld [vmem:[%s7614_s2 + $0x4e8] ss:$16 sps:$4 sm:$0xff]  }
  0x67   :  { %1325 = vmatpush1.bf16.msra.mxu0 %v5164_v47  ;;  %1497 = vmatpush1.bf16.msra.mxu1 %v5167_v48  ;;  %v5256_v47 = vld [vmem:[%s7614_s2 + $0x504] ss:$16 sps:$4 sm:$0xff]   ;;  %v5259_v48 = vld [vmem:[%s7614_s2 + $0x50c] ss:$16 sps:$4 sm:$0xff]  }
  0x68   :  { %1326 = vmatprep.subr.bf16.mxu0 %v5172_v49  ;;  %1498 = vmatprep.subr.bf16.mxu1 %v5175_v50  ;;  %v5254_v49 = vld [vmem:[%s7614_s2 + $0x500] ss:$16 sps:$4 sm:$0xff]   ;;  %v5257_v50 = vld [vmem:[%s7614_s2 + $0x508] ss:$16 sps:$4 sm:$0xff]  }
  0x6b   :  { %1327 = vmatpush1.bf16.msra.mxu0 %v5170_v51  ;;  %1499 = vmatpush1.bf16.msra.mxu1 %v5173_v52  ;;  %v5262_v51 = vld [vmem:[%s7614_s2 + $0x524] ss:$16 sps:$4 sm:$0xff]   ;;  %v5265_v52 = vld [vmem:[%s7614_s2 + $0x52c] ss:$16 sps:$4 sm:$0xff]  }
  0x6c   :  { %1328 = vmatprep.subr.bf16.mxu0 %v5178_v53  ;;  %1500 = vmatprep.subr.bf16.mxu1 %v5181_v54  ;;  %v5260_v53 = vld [vmem:[%s7614_s2 + $0x520] ss:$16 sps:$4 sm:$0xff]   ;;  %v5263_v54 = vld [vmem:[%s7614_s2 + $0x528] ss:$16 sps:$4 sm:$0xff]  }
  0x6f   :  { %1329 = vmatpush1.bf16.msra.mxu0 %v5176_v55  ;;  %1501 = vmatpush1.bf16.msra.mxu1 %v5179_v56  ;;  %v5268_v55 = vld [vmem:[%s7614_s2 + $0x544] ss:$16 sps:$4 sm:$0xff]   ;;  %v5271_v56 = vld [vmem:[%s7614_s2 + $0x54c] ss:$16 sps:$4 sm:$0xff]  }
  0x70   :  { %1330 = vmatprep.subr.bf16.mxu0 %v5184_v57  ;;  %1502 = vmatprep.subr.bf16.mxu1 %v5187_v58  ;;  %v5266_v57 = vld [vmem:[%s7614_s2 + $0x540] ss:$16 sps:$4 sm:$0xff]   ;;  %v5269_v58 = vld [vmem:[%s7614_s2 + $0x548] ss:$16 sps:$4 sm:$0xff]  }
  0x73   :  { %1331 = vmatpush1.bf16.msra.mxu0 %v5182_v59  ;;  %1503 = vmatpush1.bf16.msra.mxu1 %v5185_v60  ;;  %v5274_v59 = vld [vmem:[%s7614_s2 + $0x564] ss:$16 sps:$4 sm:$0xff]   ;;  %v5277_v60 = vld [vmem:[%s7614_s2 + $0x56c] ss:$16 sps:$4 sm:$0xff]  }
  0x74   :  { %1332 = vmatprep.subr.bf16.mxu0 %v5190_v61  ;;  %1504 = vmatprep.subr.bf16.mxu1 %v5193_v62  ;;  %v5272_v61 = vld [vmem:[%s7614_s2 + $0x560] ss:$16 sps:$4 sm:$0xff]   ;;  %v5275_v62 = vld [vmem:[%s7614_s2 + $0x568] ss:$16 sps:$4 sm:$0xff]  }
  0x77   :  { %1333 = vmatpush1.bf16.msra.mxu0 %v5188_v63  ;;  %1505 = vmatpush1.bf16.msra.mxu1 %v5191_v0  ;;  %v5280_v63 = vld [vmem:[%s7614_s2 + $0x584] ss:$16 sps:$4 sm:$0xff]   ;;  %v5283_v0 = vld [vmem:[%s7614_s2 + $0x58c] ss:$16 sps:$4 sm:$0xff]  }
  0x78   :  { %1334 = vmatprep.subr.bf16.mxu0 %v5196_v1  ;;  %1506 = vmatprep.subr.bf16.mxu1 %v5199_v2  ;;  %v5278_v1 = vld [vmem:[%s7614_s2 + $0x580] ss:$16 sps:$4 sm:$0xff]   ;;  %v5281_v2 = vld [vmem:[%s7614_s2 + $0x588] ss:$16 sps:$4 sm:$0xff]  }
  0x7b   :  { %1335 = vmatpush1.bf16.msra.mxu0 %v5194_v3  ;;  %1507 = vmatpush1.bf16.msra.mxu1 %v5197_v4  ;;  %v5286_v3 = vld [vmem:[%s7614_s2 + $0x5a4] ss:$16 sps:$4 sm:$0xff]   ;;  %v5289_v4 = vld [vmem:[%s7614_s2 + $0x5ac] ss:$16 sps:$4 sm:$0xff]  }
  0x7c   :  { %1336 = vmatprep.subr.bf16.mxu0 %v5202_v5  ;;  %1508 = vmatprep.subr.bf16.mxu1 %v5205_v6  ;;  %v5284_v5 = vld [vmem:[%s7614_s2 + $0x5a0] ss:$16 sps:$4 sm:$0xff]   ;;  %v5287_v6 = vld [vmem:[%s7614_s2 + $0x5a8] ss:$16 sps:$4 sm:$0xff]  }
  0x7f   :  { %1337 = vmatpush1.bf16.msra.mxu0 %v5200_v7  ;;  %1509 = vmatpush1.bf16.msra.mxu1 %v5203_v8  ;;  %v5292_v7 = vld [vmem:[%s7614_s2 + $0x5c4] ss:$16 sps:$4 sm:$0xff]   ;;  %v5295_v8 = vld [vmem:[%s7614_s2 + $0x5cc] ss:$16 sps:$4 sm:$0xff]  }
  0x80   :  { %1349 = vmatprep.subr.bf16.mxu0 %v5208_v9  ;;  %1521 = vmatprep.subr.bf16.mxu1 %v5211_v12  ;;  %v5290_v9 = vld [vmem:[%s7614_s2 + $0x5c0] ss:$16 sps:$4 sm:$0xff]   ;;  %v5301_v12 = vld [vmem:[%s7614_s2 + $0x5ec] ss:$16 sps:$4 sm:$0xff]  }
  0x82   :  { %1339 = vmatmul.mubr.bf16.vlgmr.msra.gmra.mrb[0].mxu0 %v54_v15  ;;  %1511 = vmatmul.mubr.bf16.vlgmr.msra.gmra.mrb[0].mxu1 %v54_v15  ;;  %v42_v15 = vld [vmem:[%s7615_s0 + $0x20] sm:$0xff] }
  0x83   :  { %1350 = vmatpush1.bf16.msra.mxu0 %v5206_v13  ;;  %1522 = vmatpush1.bf16.msra.mxu1 %v5209_v14  ;;  %v5296_v13 = vld [vmem:[%s7614_s2 + $0x5e0] ss:$16 sps:$4 sm:$0xff]   ;;  %v5299_v14 = vld [vmem:[%s7614_s2 + $0x5e8] ss:$16 sps:$4 sm:$0xff]  }
  0x84   :  { %1351 = vmatprep.subr.bf16.mxu0 %v5214_v16  ;;  %1523 = vmatprep.subr.bf16.mxu1 %v5217_v17  ;;  %v49_v16 = vld [vmem:[%s7615_s0 + $0x58] sm:$0xff]  ;;  %v5304_v17 = vld [vmem:[%s7614_s2 + $0x604] ss:$16 sps:$4 sm:$0xff]  }
  0x85   :  { %1381 = vmatprep.mubr.bf16.mxu0 %v57_v23  ;;  %1553 = vmatprep.mubr.bf16.mxu1 %v57_v23  ;;  %v5832_v23 = vmov 0  }
  0x87   :  { %1352 = vmatpush1.bf16.msra.mxu0 %v5212_v19  ;;  %1524 = vmatpush1.bf16.msra.mxu1 %v5215_v20  ;;  %v56_v19 = vpack.c.bf16 %v49_v16, %v42_v15  ;;  %v5302_v20 = vld [vmem:[%s7614_s2 + $0x600] ss:$16 sps:$4 sm:$0xff]  }
  0x88   :  { %1353 = vmatprep.subr.bf16.mxu0 %v5220_v22  ;;  %1525 = vmatprep.subr.bf16.mxu1 %v5223_v24  ;;  %v5310_v22 = vld [vmem:[%s7616_s4 + $0x4] ss:$8 sps:$4 sm:$0xff]   ;;  %v44_v24 = vld [vmem:[%s7615_s0 + $0x30] sm:$0xff] }
  0x8b   :  { %1354 = vmatpush1.bf16.msra.mxu0 %v5218_v25  ;;  %1526 = vmatpush1.bf16.msra.mxu1 %v5221_v26  ;;  %v51_v25 = vld [vmem:[%s7615_s0 + $0x68] sm:$0xff] }
  0x8c   :  { %1355 = vmatprep.subr.bf16.mxu0 %v5226_v27  ;;  %1527 = vmatprep.subr.bf16.mxu1 %v5229_v28  ;;  %v58_v26 = vpack.c.bf16 %v51_v25, %v44_v24  ;;  %v5308_v27 = vld [vmem:[%s7616_s4] ss:$8 sps:$4 sm:$0xff]   ;;  %v5313_v28 = vld [vmem:[%s7616_s4 + $0x14] ss:$8 sps:$4 sm:$0xff]  }
  0x8f   :  { %1356 = vmatpush1.bf16.msra.mxu0 %v5224_v29  ;;  %1528 = vmatpush1.bf16.msra.mxu1 %v5227_v30  ;;  %v5311_v29 = vld [vmem:[%s7616_s4 + $0x10] ss:$8 sps:$4 sm:$0xff]   ;;  %v5316_v30 = vld [vmem:[%s7616_s4 + $0x24] ss:$8 sps:$4 sm:$0xff]  }
  0x90   :  { %1357 = vmatprep.subr.bf16.mxu0 %v5232_v31  ;;  %1529 = vmatprep.subr.bf16.mxu1 %v5235_v32  ;;  %v5314_v31 = vld [vmem:[%s7616_s4 + $0x20] ss:$8 sps:$4 sm:$0xff]   ;;  %v5319_v32 = vld [vmem:[%s7616_s4 + $0x34] ss:$8 sps:$4 sm:$0xff]  }
  0x93   :  { %1358 = vmatpush1.bf16.msra.mxu0 %v5230_v33  ;;  %1530 = vmatpush1.bf16.msra.mxu1 %v5233_v34  ;;  %v5317_v33 = vld [vmem:[%s7616_s4 + $0x30] ss:$8 sps:$4 sm:$0xff]   ;;  %v5322_v34 = vld [vmem:[%s7616_s4 + $0x44] ss:$8 sps:$4 sm:$0xff]  }
  0x94   :  { %1359 = vmatprep.subr.bf16.mxu0 %v5238_v35  ;;  %1531 = vmatprep.subr.bf16.mxu1 %v5241_v36  ;;  %v5320_v35 = vld [vmem:[%s7616_s4 + $0x40] ss:$8 sps:$4 sm:$0xff]   ;;  %v5325_v36 = vld [vmem:[%s7616_s4 + $0x54] ss:$8 sps:$4 sm:$0xff]  }
  0x97   :  { %1360 = vmatpush1.bf16.msra.mxu0 %v5236_v37  ;;  %1532 = vmatpush1.bf16.msra.mxu1 %v5239_v38  ;;  %v5323_v37 = vld [vmem:[%s7616_s4 + $0x50] ss:$8 sps:$4 sm:$0xff]   ;;  %v5328_v38 = vld [vmem:[%s7616_s4 + $0x64] ss:$8 sps:$4 sm:$0xff]  }
  0x98   :  { %1361 = vmatprep.subr.bf16.mxu0 %v5244_v39  ;;  %1533 = vmatprep.subr.bf16.mxu1 %v5247_v40  ;;  %v5326_v39 = vld [vmem:[%s7616_s4 + $0x60] ss:$8 sps:$4 sm:$0xff]   ;;  %v5331_v40 = vld [vmem:[%s7616_s4 + $0x74] ss:$8 sps:$4 sm:$0xff]  }
  0x9b   :  { %1362 = vmatpush1.bf16.msra.mxu0 %v5242_v41  ;;  %1534 = vmatpush1.bf16.msra.mxu1 %v5245_v42  ;;  %v5329_v41 = vld [vmem:[%s7616_s4 + $0x70] ss:$8 sps:$4 sm:$0xff]   ;;  %v5334_v42 = vld [vmem:[%s7616_s4 + $0x84] ss:$8 sps:$4 sm:$0xff]  }
  0x9c   :  { %1363 = vmatprep.subr.bf16.mxu0 %v5250_v43  ;;  %1535 = vmatprep.subr.bf16.mxu1 %v5253_v44  ;;  %v5332_v43 = vld [vmem:[%s7616_s4 + $0x80] ss:$8 sps:$4 sm:$0xff]   ;;  %v5337_v44 = vld [vmem:[%s7616_s4 + $0x94] ss:$8 sps:$4 sm:$0xff]  }
  0x9f   :  { %1364 = vmatpush1.bf16.msra.mxu0 %v5248_v45  ;;  %1536 = vmatpush1.bf16.msra.mxu1 %v5251_v46  ;;  %v5335_v45 = vld [vmem:[%s7616_s4 + $0x90] ss:$8 sps:$4 sm:$0xff]   ;;  %v5340_v46 = vld [vmem:[%s7616_s4 + $0xa4] ss:$8 sps:$4 sm:$0xff]  }
  0xa0   :  { %1365 = vmatprep.subr.bf16.mxu0 %v5256_v47  ;;  %1537 = vmatprep.subr.bf16.mxu1 %v5259_v48  ;;  %v5338_v47 = vld [vmem:[%s7616_s4 + $0xa0] ss:$8 sps:$4 sm:$0xff]   ;;  %v5343_v48 = vld [vmem:[%s7616_s4 + $0xb4] ss:$8 sps:$4 sm:$0xff]  }
  0xa3   :  { %1366 = vmatpush1.bf16.msra.mxu0 %v5254_v49  ;;  %1538 = vmatpush1.bf16.msra.mxu1 %v5257_v50  ;;  %v5341_v49 = vld [vmem:[%s7616_s4 + $0xb0] ss:$8 sps:$4 sm:$0xff]   ;;  %v5346_v50 = vld [vmem:[%s7616_s4 + $0xc4] ss:$8 sps:$4 sm:$0xff]  }
  0xa4   :  { %1367 = vmatprep.subr.bf16.mxu0 %v5262_v51  ;;  %1539 = vmatprep.subr.bf16.mxu1 %v5265_v52  ;;  %v5344_v51 = vld [vmem:[%s7616_s4 + $0xc0] ss:$8 sps:$4 sm:$0xff]   ;;  %v5349_v52 = vld [vmem:[%s7616_s4 + $0xd4] ss:$8 sps:$4 sm:$0xff]  }
  0xa7   :  { %1368 = vmatpush1.bf16.msra.mxu0 %v5260_v53  ;;  %1540 = vmatpush1.bf16.msra.mxu1 %v5263_v54  ;;  %v5347_v53 = vld [vmem:[%s7616_s4 + $0xd0] ss:$8 sps:$4 sm:$0xff]   ;;  %v5352_v54 = vld [vmem:[%s7616_s4 + $0xe4] ss:$8 sps:$4 sm:$0xff]  }
  0xa8   :  { %1369 = vmatprep.subr.bf16.mxu0 %v5268_v55  ;;  %1541 = vmatprep.subr.bf16.mxu1 %v5271_v56  ;;  %v5350_v55 = vld [vmem:[%s7616_s4 + $0xe0] ss:$8 sps:$4 sm:$0xff]   ;;  %v5355_v56 = vld [vmem:[%s7616_s4 + $0xf4] ss:$8 sps:$4 sm:$0xff]  }
  0xab   :  { %1370 = vmatpush1.bf16.msra.mxu0 %v5266_v57  ;;  %1542 = vmatpush1.bf16.msra.mxu1 %v5269_v58  ;;  %v5353_v57 = vld [vmem:[%s7616_s4 + $0xf0] ss:$8 sps:$4 sm:$0xff]   ;;  %v5358_v58 = vld [vmem:[%s7616_s4 + $0x104] ss:$8 sps:$4 sm:$0xff]  }
  0xac   :  { %1371 = vmatprep.subr.bf16.mxu0 %v5274_v59  ;;  %1543 = vmatprep.subr.bf16.mxu1 %v5277_v60  ;;  %v5404_v59 = vld [vmem:[%s7617_s6] ss:$16 sps:$4 sm:$0xff]   ;;  %v5406_v60 = vld [vmem:[%s7617_s6 + $0x4] ss:$16 sps:$4 sm:$0xff]  }
  0xaf   :  { %1372 = vmatpush1.bf16.msra.mxu0 %v5272_v61  ;;  %1544 = vmatpush1.bf16.msra.mxu1 %v5275_v62  ;;  %v5407_v61 = vld [vmem:[%s7617_s6 + $0x20] ss:$16 sps:$4 sm:$0xff]   ;;  %v5409_v62 = vld [vmem:[%s7617_s6 + $0x24] ss:$16 sps:$4 sm:$0xff]  }
  0xb0   :  { %1373 = vmatprep.subr.bf16.mxu0 %v5280_v63  ;;  %1545 = vmatprep.subr.bf16.mxu1 %v5283_v0  ;;  %v259_v63 = vlaneseq }
  0xb2   :  { %v6637_v0 = vshrl.u32 %v259_v63, 7  ;;  %v5392_v63 = vld [vmem:[%s7616_s4 + $0x1c0] ss:$8 sps:$4 sm:$0xff]  }
  0xb3   :  { %1374 = vmatpush1.bf16.msra.mxu0 %v5278_v1  ;;  %1546 = vmatpush1.bf16.msra.mxu1 %v5281_v2 }
  0xb4   :  { %1375 = vmatprep.subr.bf16.mxu0 %v5286_v3  ;;  %1547 = vmatprep.subr.bf16.mxu1 %v5289_v4  ;;  %v6640_v1 = vsub.s32 0, %v6637_v0  ;;  %v6643_v2 = vsub.s32 2, %v6637_v0  ;;  %v257_v3 = vld [vmem:[%s7618_s3] sm:$0xf]  ;;  %v6649_v4 = vsub.s32 1, %v6637_v0 }
  0xb7   :  { %1376 = vmatpush1.bf16.msra.mxu0 %v5284_v5  ;;  %1548 = vmatpush1.bf16.msra.mxu1 %v5287_v6  ;;  %v6652_v5 = vsub.s32 3, %v6637_v0  ;;  %v262_v6 = vrot.slane %v257_v3, %v6640_v1 }
  0xb8   :  { %1377 = vmatprep.subr.bf16.mxu0 %v5292_v7  ;;  %1549 = vmatprep.subr.bf16.mxu1 %v5295_v8  ;;  %v270_v7 = vrot.slane %v257_v3, %v6643_v2  ;;  %v266_v8 = vrot.slane %v257_v3, %v6649_v4 }
  0xbb   :  { %1378 = vmatpush1.bf16.msra.mxu0 %v5290_v9  ;;  %1550 = vmatpush1.bf16.msra.mxu1 %v5293_v10  ;;  %v274_v9 = vrot.slane %v257_v3, %v6652_v5  ;;  %v5397_v3 = vld [vmem:[%s7616_s4 + $0x1d4] ss:$8 sps:$4 sm:$0xff]  }
  0xbc   :  { %1379 = vmatprep.subr.bf16.mxu0 %v5298_v11  ;;  %1551 = vmatprep.subr.bf16.mxu1 %v5301_v12 }
  0xbf   :  { %1380 = vmatpush1.bf16.msra.mxu0 %v5296_v13  ;;  %1552 = vmatpush1.bf16.msra.mxu1 %v5299_v14 }
  0xc0   :  { %1392 = vmatprep.subr.bf16.mxu0 %v5304_v17  ;;  %1564 = vmatprep.subr.bf16.mxu1 %v5307_v18 }
  0xc2   :  { %1382 = vmatmul.mubr.bf16.vlgmr.msra.gmra.mrb[0].mxu0 %v56_v19  ;;  %1554 = vmatmul.mubr.bf16.vlgmr.msra.gmra.mrb[0].mxu1 %v56_v19 }
  0xc3   :  { %1393 = vmatpush1.bf16.msra.mxu0 %v5302_v20  ;;  %1565 = vmatpush1.bf16.msra.mxu1 %v5305_v21 }
  0xc4   :  { %1424 = vmatprep.mubr.bf16.mxu0 %v5832_v23  ;;  %1596 = vmatprep.mubr.bf16.mxu1 %v5832_v23 }
  0xc5   :  { %2015 = vmatprep.subr.bf16.mxu0 %v5310_v22  ;;  %2326 = vmatprep.subr.bf16.mxu1 %v5406_v60  ;;  %v5391_v60 = vld [vmem:[%s7616_s4 + $0x1b4] ss:$8 sps:$4 sm:$0xff]  }
  0xce   :  { %4553 = vmatmul.mubr.msk.bf16.vlgmr.msra.gmra.mrb[0].mxu0 %vm1259_vm0, %v58_v26  ;;  %4554 = vmatmul.mubr.msk.bf16.vlgmr.msra.gmra.mrb[0].mxu1 %vm1259_vm0, %v58_v26 }
  0xcf   :  { %2016 = vmatpush1.bf16.msra.mxu0 %v5308_v27  ;;  %2358 = vmatprep.mubr.bf16.mxu1 %v5832_v23 }
  0xd0   :  { %2017 = vmatprep.subr.bf16.mxu0 %v5313_v28  ;;  %2327 = vmatpush1.bf16.msra.mxu1 %v5404_v59  ;;  %v5386_v59 = vld [vmem:[%s7616_s4 + $0x1a0] ss:$8 sps:$4 sm:$0xff]  }
  0xd1   :  { %2328 = vmatprep.subr.bf16.mxu1 %v5409_v62  ;;  %v5394_v62 = vld [vmem:[%s7616_s4 + $0x1c4] ss:$8 sps:$4 sm:$0xff]  }
  0xd3   :  { %2018 = vmatpush1.bf16.msra.mxu0 %v5311_v29 }
  0xd4   :  { %2019 = vmatprep.subr.bf16.mxu0 %v5316_v30  ;;  %2329 = vmatpush1.bf16.msra.mxu1 %v5407_v61  ;;  %v5389_v61 = vld [vmem:[%s7616_s4 + $0x1b0] ss:$8 sps:$4 sm:$0xff]  }
  0xd7   :  { %2020 = vmatpush1.bf16.msra.mxu0 %v5314_v31 }
  0xd8   :  { %2021 = vmatprep.subr.bf16.mxu0 %v5319_v32 }
  0xdb   :  { %2022 = vmatpush1.bf16.msra.mxu0 %v5317_v33 }
  0xdc   :  { %2023 = vmatprep.subr.bf16.mxu0 %v5322_v34 }
  0xdf   :  { %2024 = vmatpush1.bf16.msra.mxu0 %v5320_v35 }
  0xe0   :  { %2025 = vmatprep.subr.bf16.mxu0 %v5325_v36 }
  0xe3   :  { %2026 = vmatpush1.bf16.msra.mxu0 %v5323_v37 }
  0xe4   :  { %2027 = vmatprep.subr.bf16.mxu0 %v5328_v38 }
  0xe7   :  { %2028 = vmatpush1.bf16.msra.mxu0 %v5326_v39  ;;  %v5356_v39 = vld [vmem:[%s7616_s4 + $0x100] ss:$8 sps:$4 sm:$0xff]  }
  0xe8   :  { %2029 = vmatprep.subr.bf16.mxu0 %v5331_v40  ;;  %v5361_v40 = vld [vmem:[%s7616_s4 + $0x114] ss:$8 sps:$4 sm:$0xff]  }
  0xeb   :  { %2030 = vmatpush1.bf16.msra.mxu0 %v5329_v41  ;;  %v5359_v41 = vld [vmem:[%s7616_s4 + $0x110] ss:$8 sps:$4 sm:$0xff]  }
  0xec   :  { %2031 = vmatprep.subr.bf16.mxu0 %v5334_v42  ;;  %v5364_v42 = vld [vmem:[%s7616_s4 + $0x124] ss:$8 sps:$4 sm:$0xff]  }
  0xef   :  { %2032 = vmatpush1.bf16.msra.mxu0 %v5332_v43  ;;  %v5362_v43 = vld [vmem:[%s7616_s4 + $0x120] ss:$8 sps:$4 sm:$0xff]  }
  0xf0   :  { %2033 = vmatprep.subr.bf16.mxu0 %v5337_v44  ;;  %v5367_v44 = vld [vmem:[%s7616_s4 + $0x134] ss:$8 sps:$4 sm:$0xff]  }
  0xf3   :  { %2034 = vmatpush1.bf16.msra.mxu0 %v5335_v45  ;;  %v5365_v45 = vld [vmem:[%s7616_s4 + $0x130] ss:$8 sps:$4 sm:$0xff]  }
  0xf4   :  { %2035 = vmatprep.subr.bf16.mxu0 %v5340_v46  ;;  %v5370_v46 = vld [vmem:[%s7616_s4 + $0x144] ss:$8 sps:$4 sm:$0xff]  }
  0xf7   :  { %2036 = vmatpush1.bf16.msra.mxu0 %v5338_v47  ;;  %v5368_v47 = vld [vmem:[%s7616_s4 + $0x140] ss:$8 sps:$4 sm:$0xff]  }
  0xf8   :  { %2037 = vmatprep.subr.bf16.mxu0 %v5343_v48  ;;  %v5373_v48 = vld [vmem:[%s7616_s4 + $0x154] ss:$8 sps:$4 sm:$0xff]  }
  0xfb   :  { %2038 = vmatpush1.bf16.msra.mxu0 %v5341_v49  ;;  %v5371_v49 = vld [vmem:[%s7616_s4 + $0x150] ss:$8 sps:$4 sm:$0xff]  }
  0xfc   :  { %2039 = vmatprep.subr.bf16.mxu0 %v5346_v50  ;;  %v5376_v50 = vld [vmem:[%s7616_s4 + $0x164] ss:$8 sps:$4 sm:$0xff]  }
  0xff   :  { %2040 = vmatpush1.bf16.msra.mxu0 %v5344_v51  ;;  %v5374_v51 = vld [vmem:[%s7616_s4 + $0x160] ss:$8 sps:$4 sm:$0xff]  }
 0x100   :  { %2041 = vmatprep.subr.bf16.mxu0 %v5349_v52  ;;  %v5379_v52 = vld [vmem:[%s7616_s4 + $0x174] ss:$8 sps:$4 sm:$0xff]  }
 0x103   :  { %2042 = vmatpush1.bf16.msra.mxu0 %v5347_v53  ;;  %v5377_v53 = vld [vmem:[%s7616_s4 + $0x170] ss:$8 sps:$4 sm:$0xff]  }
 0x104   :  { %2043 = vmatprep.subr.bf16.mxu0 %v5352_v54  ;;  %v5382_v54 = vld [vmem:[%s7616_s4 + $0x184] ss:$8 sps:$4 sm:$0xff]  }
 0x107   :  { %2044 = vmatpush1.bf16.msra.mxu0 %v5350_v55  ;;  %v5380_v55 = vld [vmem:[%s7616_s4 + $0x180] ss:$8 sps:$4 sm:$0xff]  }
 0x108   :  { %2045 = vmatprep.subr.bf16.mxu0 %v5355_v56  ;;  %v5385_v56 = vld [vmem:[%s7616_s4 + $0x194] ss:$8 sps:$4 sm:$0xff]  }
 0x10b   :  { %2046 = vmatpush1.bf16.msra.mxu0 %v5353_v57  ;;  %v5383_v57 = vld [vmem:[%s7616_s4 + $0x190] ss:$8 sps:$4 sm:$0xff]  }
 0x10c   :  { %2058 = vmatprep.subr.bf16.mxu0 %v5358_v58  ;;  %v5388_v58 = vld [vmem:[%s7616_s4 + $0x1a4] ss:$8 sps:$4 sm:$0xff]  }
 0x1a1   :  { %v1426_v10 = vpop.f32.mrb[0].mxu0  ;;  %v1598_v11 = vpop.f32.mrb[0].mxu1 }
 0x1a2   :  { %v4949_v12 = vadd.f32 %v1426_v10, %v262_v6  ;;  %v4953_v13 = vadd.f32 %v1598_v11, %v270_v7  ;;  %v1428_v14 = vpop.f32.mrb[1].mxu0  ;;  %v1600_v15 = vpop.f32.mrb[1].mxu1  ;;  %v5401_v10 = vld [vmem:[%s7616_s4 + $0x1f0] ss:$8 sps:$4 sm:$0xff]   ;;  %v5412_v11 = vld [vmem:[%s7617_s6 + $0x44] ss:$16 sps:$4 sm:$0xff]  }
 0x1a3   :  { %v4950_v16 = vadd.f32 %v1428_v14, %v266_v8  ;;  %v4954_v17 = vadd.f32 %v1600_v15, %v274_v9  ;;  %v1430_v18 = vpop.f32.mrb[2].mxu0  ;;  %v1602_v19 = vpop.f32.mrb[2].mxu1  ;;  %2330 = vmatprep.subr.bf16.mxu1 %v5412_v11  ;;  %v5413_v14 = vld [vmem:[%s7617_s6 + $0x60] ss:$16 sps:$4 sm:$0xff]   ;;  %v5418_v15 = vld [vmem:[%s7617_s6 + $0x84] ss:$16 sps:$4 sm:$0xff]  }
 0x1a4   :  { %v4951_v20 = vadd.f32 %v1430_v18, %v262_v6  ;;  %v4955_v21 = vadd.f32 %v1602_v19, %v270_v7  ;;  %v1432_v22 = vpop.f32.mrb[3].mxu0  ;;  %v1604_v24 = vpop.f32.mrb[3].mxu1  ;;  %v1607_v27 = vmax.f32 %v4949_v12, 0.0  ;;  %v1609_v28 = vmax.f32 %v4953_v13, 0.0  ;;  %v5395_v6 = vld [vmem:[%s7616_s4 + $0x1d0] ss:$8 sps:$4 sm:$0xff]  }
 0x1a5   :  { %v4952_v25 = vadd.f32 %v1432_v22, %v266_v8  ;;  %v4956_v26 = vadd.f32 %v1604_v24, %v274_v9  ;;  %v1608_v31 = vmax.f32 %v4950_v16, 0.0  ;;  %v1610_v32 = vmax.f32 %v4954_v17, 0.0  ;;  %v5400_v7 = vld [vmem:[%s7616_s4 + $0x1e4] ss:$8 sps:$4 sm:$0xff]   ;;  %v5398_v8 = vld [vmem:[%s7616_s4 + $0x1e0] ss:$8 sps:$4 sm:$0xff]  }
 0x1a6   :  { %v1611_v29 = vmax.f32 %v4951_v20, 0.0  ;;  %v1613_v30 = vmax.f32 %v4955_v21, 0.0  ;;  %v5403_v9 = vld [vmem:[%s7616_s4 + $0x1f4] ss:$8 sps:$4 sm:$0xff]   ;;  %v5410_v12 = vld [vmem:[%s7617_s6 + $0x40] ss:$16 sps:$4 sm:$0xff]  }
 0x1a7   :  { %v1612_v33 = vmax.f32 %v4952_v25, 0.0  ;;  %v1614_v34 = vmax.f32 %v4956_v26, 0.0  ;;  %2331 = vmatpush1.bf16.msra.mxu1 %v5410_v12  ;;  %v5415_v13 = vld [vmem:[%s7617_s6 + $0x64] ss:$16 sps:$4 sm:$0xff]   ;;  %v5416_v16 = vld [vmem:[%s7617_s6 + $0x80] ss:$16 sps:$4 sm:$0xff]  }
 0x1a8   :  { %v1615_v35 = vpack.c.bf16 %v1611_v29, %v1607_v27  ;;  %v6658_v36 = vpack.c.bf16 %v1613_v30, %v1609_v28  ;;  %2332 = vmatprep.subr.bf16.mxu1 %v5415_v13  ;;  %v5421_v17 = vld [vmem:[%s7617_s6 + $0xa4] ss:$16 sps:$4 sm:$0xff]   ;;  %v5419_v18 = vld [vmem:[%s7617_s6 + $0xa0] ss:$16 sps:$4 sm:$0xff]   ;;  %v5430_v24 = vld [vmem:[%s7617_s6 + $0xc] ss:$16 sps:$4 sm:$0xff]  }
 0x1a9   :  { %v1616_v37 = vpack.c.bf16 %v1612_v33, %v1608_v31  ;;  %v1618_v38 = vpack.c.bf16 %v1614_v34, %v1610_v32  ;;  %v5424_v19 = vld [vmem:[%s7617_s6 + $0xc4] ss:$16 sps:$4 sm:$0xff]   ;;  %v5422_v20 = vld [vmem:[%s7617_s6 + $0xc0] ss:$16 sps:$4 sm:$0xff]   ;;  %v5457_v26 = vld [vmem:[%s7619_s8 + $0xc] ss:$28 sps:$4 sm:$0xff]  }
 0x1aa   :  { %v5427_v21 = vld [vmem:[%s7617_s6 + $0xe4] ss:$16 sps:$4 sm:$0xff]   ;;  %v5425_v22 = vld [vmem:[%s7617_s6 + $0xe0] ss:$16 sps:$4 sm:$0xff]   ;;  %v5469_v29 = vld [vmem:[%s7619_s8 + $0x7c] ss:$28 sps:$4 sm:$0xff]  }
 0x1ab   :  { %2047 = vmatprep.mubr.bf16.mxu0 %v1616_v37  ;;  %2333 = vmatpush1.bf16.msra.mxu1 %v5413_v14  ;;  %v5455_v25 = vld [vmem:[%s7619_s8 + $0x8] ss:$28 sps:$4 sm:$0xff]   ;;  %v5461_v27 = vld [vmem:[%s7619_s8 + $0x40] ss:$28 sps:$4 sm:$0xff]   ;;  %v5467_v30 = vld [vmem:[%s7619_s8 + $0x78] ss:$28 sps:$4 sm:$0xff]  }
 0x1ac   :  { %2048 = vmatmul.mubr.bf16.vlgmr.msra.gmra.mrb[4].mxu0 %v1615_v35  ;;  %2334 = vmatprep.subr.bf16.mxu1 %v5418_v15  ;;  %v5463_v28 = vld [vmem:[%s7619_s8 + $0x44] ss:$28 sps:$4 sm:$0xff]   ;;  %v5475_v31 = vld [vmem:[%s7619_s8 + $0xb4] ss:$28 sps:$4 sm:$0xff]   ;;  %v5481_v33 = vld [vmem:[%s7619_s8 + $0xec] ss:$28 sps:$4 sm:$0xff]  }
 0x1ad   :  { %2059 = vmatpush1.bf16.msra.mxu0 %v5356_v39  ;;  %2090 = vmatprep.mubr.bf16.mxu0 %v1618_v38  ;;  %v5473_v32 = vld [vmem:[%s7619_s8 + $0xb0] ss:$28 sps:$4 sm:$0xff]   ;;  %v5479_v34 = vld [vmem:[%s7619_s8 + $0xe8] ss:$28 sps:$4 sm:$0xff]   ;;  %v5493_v37 = vld [vmem:[%s7619_s8 + $0x15c] ss:$28 sps:$4 sm:$0xff]  }
 0x1ae   :  { %2060 = vmatprep.subr.bf16.mxu0 %v5361_v40  ;;  %v5487_v35 = vld [vmem:[%s7619_s8 + $0x124] ss:$28 sps:$4 sm:$0xff]   ;;  %v5491_v38 = vld [vmem:[%s7619_s8 + $0x158] ss:$28 sps:$4 sm:$0xff]   ;;  %v5497_v40 = vld [vmem:[%s7619_s8 + $0x190] ss:$28 sps:$4 sm:$0xff]  }
 0x1af   :  { %2335 = vmatpush1.bf16.msra.mxu1 %v5416_v16  ;;  %v5499_v39 = vld [vmem:[%s7619_s8 + $0x194] ss:$28 sps:$4 sm:$0xff]   ;;  %v5428_v16 = vld [vmem:[%s7617_s6 + $0x8] ss:$16 sps:$4 sm:$0xff]  }
 0x1b0   :  { %2336 = vmatprep.subr.bf16.mxu1 %v5421_v17 }
 0x1b1   :  { %2061 = vmatpush1.bf16.msra.mxu0 %v5359_v41  ;;  %v5505_v41 = vld [vmem:[%s7619_s8 + $0x1cc] ss:$28 sps:$4 sm:$0xff]  }
 0x1b2   :  { %2062 = vmatprep.subr.bf16.mxu0 %v5364_v42  ;;  %v5503_v42 = vld [vmem:[%s7619_s8 + $0x1c8] ss:$28 sps:$4 sm:$0xff]  }
 0x1b3   :  { %2337 = vmatpush1.bf16.msra.mxu1 %v5419_v18  ;;  %v5433_v18 = vld [vmem:[%s7617_s6 + $0x2c] ss:$16 sps:$4 sm:$0xff]  }
 0x1b4   :  { %2338 = vmatprep.subr.bf16.mxu1 %v5424_v19 }
 0x1b5   :  { %2063 = vmatpush1.bf16.msra.mxu0 %v5362_v43  ;;  %v5511_v43 = vld [vmem:[%s7619_s8 + $0x204] ss:$28 sps:$4 sm:$0xff]  }
 0x1b6   :  { %2064 = vmatprep.subr.bf16.mxu0 %v5367_v44  ;;  %v5509_v44 = vld [vmem:[%s7619_s8 + $0x200] ss:$28 sps:$4 sm:$0xff]  }
 0x1b7   :  { %2339 = vmatpush1.bf16.msra.mxu1 %v5422_v20  ;;  %v5431_v20 = vld [vmem:[%s7617_s6 + $0x28] ss:$16 sps:$4 sm:$0xff]  }
 0x1b8   :  { %2340 = vmatprep.subr.bf16.mxu1 %v5427_v21  ;;  %v5436_v21 = vld [vmem:[%s7617_s6 + $0x4c] ss:$16 sps:$4 sm:$0xff]  }
 0x1b9   :  { %2065 = vmatpush1.bf16.msra.mxu0 %v5365_v45  ;;  %v5517_v45 = vld [vmem:[%s7619_s8 + $0x23c] ss:$28 sps:$4 sm:$0xff]  }
 0x1ba   :  { %2066 = vmatprep.subr.bf16.mxu0 %v5370_v46  ;;  %v5515_v46 = vld [vmem:[%s7619_s8 + $0x238] ss:$28 sps:$4 sm:$0xff]  }
 0x1bb   :  { %2341 = vmatpush1.bf16.msra.mxu1 %v5425_v22  ;;  %v5434_v22 = vld [vmem:[%s7617_s6 + $0x48] ss:$16 sps:$4 sm:$0xff]  }
 0x1bc   :  { %2369 = vmatprep.subr.bf16.mxu1 %v5430_v24  ;;  %v5439_v24 = vld [vmem:[%s7617_s6 + $0x6c] ss:$16 sps:$4 sm:$0xff]  }
 0x1bd   :  { %2067 = vmatpush1.bf16.msra.mxu0 %v5368_v47  ;;  %v5523_v47 = vld [vmem:[%s7619_s8 + $0x274] ss:$28 sps:$4 sm:$0xff]  }
 0x1be   :  { %2068 = vmatprep.subr.bf16.mxu0 %v5373_v48  ;;  %v5521_v48 = vld [vmem:[%s7619_s8 + $0x270] ss:$28 sps:$4 sm:$0xff]  }
 0x1c1   :  { %2069 = vmatpush1.bf16.msra.mxu0 %v5371_v49  ;;  %v5529_v49 = vld [vmem:[%s7619_s8 + $0x2ac] ss:$28 sps:$4 sm:$0xff]  }
 0x1c2   :  { %2070 = vmatprep.subr.bf16.mxu0 %v5376_v50  ;;  %v5527_v50 = vld [vmem:[%s7619_s8 + $0x2a8] ss:$28 sps:$4 sm:$0xff]  }
 0x1c5   :  { %2071 = vmatpush1.bf16.msra.mxu0 %v5374_v51  ;;  %v5535_v51 = vld [vmem:[%s7619_s8 + $0x2e4] ss:$28 sps:$4 sm:$0xff]  }
 0x1c6   :  { %2072 = vmatprep.subr.bf16.mxu0 %v5379_v52  ;;  %v5533_v52 = vld [vmem:[%s7619_s8 + $0x2e0] ss:$28 sps:$4 sm:$0xff]  }
 0x1c9   :  { %2073 = vmatpush1.bf16.msra.mxu0 %v5377_v53  ;;  %v1683_v53 = vld [vmem:[%s7620_s5] sm:$0x3] }
 0x1ca   :  { %2074 = vmatprep.subr.bf16.mxu0 %v5382_v54  ;;  %v1688_v54 = vrot.slane %v1683_v53, %v6640_v1 }
 0x1cd   :  { %2075 = vmatpush1.bf16.msra.mxu0 %v5380_v55  ;;  %v1692_v55 = vrot.slane %v1683_v53, %v6649_v4  ;;  %v5514_v53 = vld [vmem:[%s7619_s8 + $0x234] ss:$28 sps:$4 sm:$0xff]  }
 0x1ce   :  { %2076 = vmatprep.subr.bf16.mxu0 %v5385_v56 }
 0x1d1   :  { %2077 = vmatpush1.bf16.msra.mxu0 %v5383_v57 }
 0x1d2   :  { %2078 = vmatprep.subr.bf16.mxu0 %v5388_v58 }
 0x1d5   :  { %2079 = vmatpush1.bf16.msra.mxu0 %v5386_v59 }
 0x1d6   :  { %2080 = vmatprep.subr.bf16.mxu0 %v5391_v60 }
 0x1d9   :  { %2081 = vmatpush1.bf16.msra.mxu0 %v5389_v61 }
 0x1da   :  { %2082 = vmatprep.subr.bf16.mxu0 %v5394_v62 }
 0x1dd   :  { %2083 = vmatpush1.bf16.msra.mxu0 %v5392_v63 }
 0x1de   :  { %2084 = vmatprep.subr.bf16.mxu0 %v5397_v3 }
 0x1e1   :  { %2085 = vmatpush1.bf16.msra.mxu0 %v5395_v6 }
 0x1e2   :  { %2086 = vmatprep.subr.bf16.mxu0 %v5400_v7 }
 0x1e5   :  { %2087 = vmatpush1.bf16.msra.mxu0 %v5398_v8 }
 0x1e6   :  { %2088 = vmatprep.subr.bf16.mxu0 %v5403_v9  ;;  %v59_v9 = vld [vmem:[%s7622_s1] sm:$0xff] }
 0x1e9   :  { %2089 = vmatpush1.bf16.msra.mxu0 %v5401_v10  ;;  %v60_v10 = vld [vmem:[%s7622_s1 + $0x8] sm:$0xff] }
 0x1ea   :  { %3955 = vmatprep.subr.bf16.mxu0 %v5457_v26  ;;  %v5440_v26 = vld [vmem:[%s7617_s6 + $0x88] ss:$16 sps:$4 sm:$0xff]  }
 0x1ec   :  { %2091 = vmatmul.mubr.bf16.vlgmr.msra.gmra.mrb[4].mxu0 %v6658_v36  ;;  %v5485_v36 = vld [vmem:[%s7619_s8 + $0x120] ss:$28 sps:$4 sm:$0xff]  }
 0x1ed   :  { %3956 = vmatpush1.bf16.msra.mxu0 %v5455_v25  ;;  %v5437_v25 = vld [vmem:[%s7617_s6 + $0x68] ss:$16 sps:$4 sm:$0xff]  }
 0x1ee   :  { %3957 = vmatprep.subr.bf16.mxu0 %v5463_v28  ;;  %v5443_v28 = vld [vmem:[%s7617_s6 + $0xa8] ss:$16 sps:$4 sm:$0xff]  }
 0x1f1   :  { %3958 = vmatpush1.bf16.msra.mxu0 %v5461_v27  ;;  %v5445_v27 = vld [vmem:[%s7617_s6 + $0xac] ss:$16 sps:$4 sm:$0xff]  }
 0x1f2   :  { %3959 = vmatprep.subr.bf16.mxu0 %v5469_v29  ;;  %v5448_v29 = vld [vmem:[%s7617_s6 + $0xcc] ss:$16 sps:$4 sm:$0xff]  }
 0x1f5   :  { %3960 = vmatpush1.bf16.msra.mxu0 %v5467_v30  ;;  %v5446_v30 = vld [vmem:[%s7617_s6 + $0xc8] ss:$16 sps:$4 sm:$0xff]  }
 0x1f6   :  { %3961 = vmatprep.subr.bf16.mxu0 %v5475_v31  ;;  %v5451_v31 = vld [vmem:[%s7617_s6 + $0xec] ss:$16 sps:$4 sm:$0xff]  }
 0x1f9   :  { %3962 = vmatpush1.bf16.msra.mxu0 %v5473_v32  ;;  %v5449_v32 = vld [vmem:[%s7617_s6 + $0xe8] ss:$16 sps:$4 sm:$0xff]  }
 0x1fa   :  { %3963 = vmatprep.subr.bf16.mxu0 %v5481_v33  ;;  %v5454_v33 = vld [vmem:[%s7619_s8 + $0x4] ss:$28 sps:$4 sm:$0xff]  }
 0x1fd   :  { %3964 = vmatpush1.bf16.msra.mxu0 %v5479_v34  ;;  %v5452_v34 = vld [vmem:[%s7619_s8] ss:$28 sps:$4 sm:$0xff]  }
 0x1fe   :  { %3965 = vmatprep.subr.bf16.mxu0 %v5487_v35  ;;  %v5460_v35 = vld [vmem:[%s7619_s8 + $0x3c] ss:$28 sps:$4 sm:$0xff]  }
 0x201   :  { %3966 = vmatpush1.bf16.msra.mxu0 %v5485_v36  ;;  %v5458_v36 = vld [vmem:[%s7619_s8 + $0x38] ss:$28 sps:$4 sm:$0xff]  }
 0x202   :  { %3967 = vmatprep.subr.bf16.mxu0 %v5493_v37  ;;  %v5466_v37 = vld [vmem:[%s7619_s8 + $0x74] ss:$28 sps:$4 sm:$0xff]  }
 0x205   :  { %3968 = vmatpush1.bf16.msra.mxu0 %v5491_v38  ;;  %v5464_v38 = vld [vmem:[%s7619_s8 + $0x70] ss:$28 sps:$4 sm:$0xff]  }
 0x206   :  { %3969 = vmatprep.subr.bf16.mxu0 %v5499_v39  ;;  %v5472_v39 = vld [vmem:[%s7619_s8 + $0xac] ss:$28 sps:$4 sm:$0xff]  }
 0x209   :  { %3970 = vmatpush1.bf16.msra.mxu0 %v5497_v40  ;;  %v5470_v40 = vld [vmem:[%s7619_s8 + $0xa8] ss:$28 sps:$4 sm:$0xff]  }
 0x20a   :  { %3971 = vmatprep.subr.bf16.mxu0 %v5505_v41  ;;  %v5478_v41 = vld [vmem:[%s7619_s8 + $0xe4] ss:$28 sps:$4 sm:$0xff]  }
 0x20d   :  { %3972 = vmatpush1.bf16.msra.mxu0 %v5503_v42  ;;  %v5476_v42 = vld [vmem:[%s7619_s8 + $0xe0] ss:$28 sps:$4 sm:$0xff]  }
 0x20e   :  { %3973 = vmatprep.subr.bf16.mxu0 %v5511_v43  ;;  %v5484_v43 = vld [vmem:[%s7619_s8 + $0x11c] ss:$28 sps:$4 sm:$0xff]  }
 0x211   :  { %3974 = vmatpush1.bf16.msra.mxu0 %v5509_v44  ;;  %v5482_v44 = vld [vmem:[%s7619_s8 + $0x118] ss:$28 sps:$4 sm:$0xff]  }
 0x212   :  { %3975 = vmatprep.subr.bf16.mxu0 %v5517_v45  ;;  %v5490_v45 = vld [vmem:[%s7619_s8 + $0x154] ss:$28 sps:$4 sm:$0xff]  }
 0x215   :  { %3976 = vmatpush1.bf16.msra.mxu0 %v5515_v46  ;;  %v5488_v46 = vld [vmem:[%s7619_s8 + $0x150] ss:$28 sps:$4 sm:$0xff]  }
 0x216   :  { %3977 = vmatprep.subr.bf16.mxu0 %v5523_v47  ;;  %v5496_v47 = vld [vmem:[%s7619_s8 + $0x18c] ss:$28 sps:$4 sm:$0xff]  }
 0x219   :  { %3978 = vmatpush1.bf16.msra.mxu0 %v5521_v48  ;;  %v5494_v48 = vld [vmem:[%s7619_s8 + $0x188] ss:$28 sps:$4 sm:$0xff]  }
 0x21a   :  { %3979 = vmatprep.subr.bf16.mxu0 %v5529_v49  ;;  %v5502_v49 = vld [vmem:[%s7619_s8 + $0x1c4] ss:$28 sps:$4 sm:$0xff]  }
 0x21d   :  { %3980 = vmatpush1.bf16.msra.mxu0 %v5527_v50  ;;  %v5500_v50 = vld [vmem:[%s7619_s8 + $0x1c0] ss:$28 sps:$4 sm:$0xff]  }
 0x21e   :  { %3981 = vmatprep.subr.bf16.mxu0 %v5535_v51  ;;  %v5508_v51 = vld [vmem:[%s7619_s8 + $0x1fc] ss:$28 sps:$4 sm:$0xff]  }
 0x221   :  { %3982 = vmatpush1.bf16.msra.mxu0 %v5533_v52  ;;  %v5506_v52 = vld [vmem:[%s7619_s8 + $0x1f8] ss:$28 sps:$4 sm:$0xff]  }
 0x2bf   :  { %v2092_v56 = vpop.f32.mrb[4].mxu0 }
 0x2c0   :  { %v4957_v57 = vadd.f32 %v2092_v56, %v1688_v54  ;;  %v2094_v58 = vpop.f32.mrb[5].mxu0  ;;  %v5518_v56 = vld [vmem:[%s7619_s8 + $0x268] ss:$28 sps:$4 sm:$0xff]  }
 0x2c1   :  { %v4958_v59 = vadd.f32 %v2094_v58, %v1692_v55  ;;  %v2096_v60 = vpop.f32.mrb[6].mxu0  ;;  %v5524_v58 = vld [vmem:[%s7619_s8 + $0x2a0] ss:$28 sps:$4 sm:$0xff]  }
 0x2c2   :  { %4345 = vst [vmem:[%s7621_s11] sm:$0xff] %v4957_v57  ;;  %v4959_v61 = vadd.f32 %v2096_v60, %v1688_v54  ;;  %v2098_v62 = vpop.f32.mrb[7].mxu0  ;;  %v5512_v54 = vld [vmem:[%s7619_s8 + $0x230] ss:$28 sps:$4 sm:$0xff]   ;;  %v5530_v60 = vld [vmem:[%s7619_s8 + $0x2d8] ss:$28 sps:$4 sm:$0xff]  }
 0x2c3   :  { %v2101_v63 = vmul.f32 0.5, %v4958_v59  ;;  %4346 = vst [vmem:[%s7621_s11 + $0x8] sm:$0xff] %v4958_v59  ;;  %v4960_v3 = vadd.f32 %v2098_v62, %v1692_v55  ;;  %v5520_v55 = vld [vmem:[%s7619_s8 + $0x26c] ss:$28 sps:$4 sm:$0xff]   ;;  %v5532_v59 = vld [vmem:[%s7619_s8 + $0x2dc] ss:$28 sps:$4 sm:$0xff]  }
 0x2c4   :  { %4347 = vst [vmem:[%s7621_s11 + $0x10] sm:$0xff] %v4959_v61  ;;  %v5541_v62 = vld [vmem:[%s7619_s8 + $0x31c] ss:$28 sps:$4 sm:$0xff]  }
 0x2c5   :  { %v2103_v6 = vmul.f32 1.442695, %v2101_v63  ;;  %v2102_v7 = vmul.f32 0.5, %v4960_v3  ;;  %4348 = vst [vmem:[%s7621_s11 + $0x18] sm:$0xff] %v4960_v3  ;;  %v5536_v63 = vld [vmem:[%s7619_s8 + $0x310] ss:$28 sps:$4 sm:$0xff]   ;;  %3983 = vmatprep.subr.bf16.mxu0 %v5541_v62 }
 0x2c6   :  { %v5539_v3 = vld [vmem:[%s7619_s8 + $0x318] ss:$28 sps:$4 sm:$0xff]  }
 0x2c7   :  { %5772 = vpow2.f32 %v2103_v6  ;;  %v2105_v8 = vmul.f32 1.442695, %v2102_v7  ;;  %3984 = vmatpush1.bf16.msra.mxu0 %v5539_v3  ;;  %v5544_v6 = vld [vmem:[%s7619_s8 + $0x34c] ss:$28 sps:$4 sm:$0xff]   ;;  %v5547_v7 = vld [vmem:[%s7619_s8 + $0x354] ss:$28 sps:$4 sm:$0xff]  }
 0x2c8   :  { %3985 = vmatprep.subr.bf16.mxu0 %v5547_v7 }
 0x2c9   :  { %5774 = vpow2.f32 %v2105_v8  ;;  %v5542_v8 = vld [vmem:[%s7619_s8 + $0x348] ss:$28 sps:$4 sm:$0xff]  }
 0x2d1   :  { %v5773_v11 = vpop.eup %5772 }
 0x2d2   :  { %v2107_v12 = vmul.f32 %v5773_v11, %v59_v9  ;;  %v5545_v9 = vld [vmem:[%s7619_s8 + $0x350] ss:$28 sps:$4 sm:$0xff]  }
 0x2d3   :  { %v5775_v13 = vpop.eup %5774  ;;  %3986 = vmatpush1.bf16.msra.mxu0 %v5545_v9  ;;  %v5553_v11 = vld [vmem:[%s7619_s8 + $0x38c] ss:$28 sps:$4 sm:$0xff]  }
 0x2d4   :  { %v2108_v14 = vmul.f32 %v5775_v13, %v60_v10  ;;  %v2109_v15 = vadd.f32 %v4957_v57, %v2107_v12  ;;  %v5526_v57 = vld [vmem:[%s7619_s8 + $0x2a4] ss:$28 sps:$4 sm:$0xff]   ;;  %3998 = vmatprep.subr.bf16.mxu0 %v5553_v11  ;;  %v5593_v9 = vld [vmem:[%s7619_s8 + $0x510] ss:$28 sps:$4 sm:$0xff]  }
 0x2d5   :  { %v5550_v10 = vld [vmem:[%s7619_s8 + $0x384] ss:$28 sps:$4 sm:$0xff]  }
 0x2d6   :  { %v2110_v17 = vadd.f32 %v4959_v61, %v2108_v14  ;;  %v5538_v61 = vld [vmem:[%s7619_s8 + $0x314] ss:$28 sps:$4 sm:$0xff]   ;;  %v7063_v12 = vld [vmem:[%s7623_s7] sm:$0xf] }
 0x2d7   :  { %v2149_v13 = vrot.slane %v7063_v12, %v6640_v1  ;;  %v2153_v14 = vrot.slane %v7063_v12, %v6649_v4 }
 0x2d8   :  { %v2111_v19 = vpack.c.bf16 %v2110_v17, %v2109_v15 }
 0x2da   :  { %2359 = vmatmul.mubr.bf16.vlgmr.msra.gmra.mrb[4].mxu1 %v2111_v19 }
 0x2db   :  { %2370 = vmatpush1.bf16.msra.mxu1 %v5428_v16  ;;  %2401 = vmatprep.mubr.bf16.mxu1 %v5832_v23  ;;  %v5442_v23 = vld [vmem:[%s7617_s6 + $0x8c] ss:$16 sps:$4 sm:$0xff]  }
 0x2dc   :  { %2371 = vmatprep.subr.bf16.mxu1 %v5433_v18 }
 0x2df   :  { %2372 = vmatpush1.bf16.msra.mxu1 %v5431_v20 }
 0x2e0   :  { %2373 = vmatprep.subr.bf16.mxu1 %v5436_v21 }
 0x2e3   :  { %2374 = vmatpush1.bf16.msra.mxu1 %v5434_v22 }
 0x2e4   :  { %2375 = vmatprep.subr.bf16.mxu1 %v5439_v24 }
 0x2e7   :  { %2376 = vmatpush1.bf16.msra.mxu1 %v5437_v25 }
 0x2e8   :  { %2377 = vmatprep.subr.bf16.mxu1 %v5442_v23 }
 0x2eb   :  { %2378 = vmatpush1.bf16.msra.mxu1 %v5440_v26 }
 0x2ec   :  { %2379 = vmatprep.subr.bf16.mxu1 %v5445_v27 }
 0x2ef   :  { %2380 = vmatpush1.bf16.msra.mxu1 %v5443_v28 }
 0x2f0   :  { %2381 = vmatprep.subr.bf16.mxu1 %v5448_v29  ;;  %v5548_v29 = vld [vmem:[%s7619_s8 + $0x380] ss:$28 sps:$4 sm:$0xff]  }
 0x2f3   :  { %2382 = vmatpush1.bf16.msra.mxu1 %v5446_v30  ;;  %v5551_v30 = vld [vmem:[%s7619_s8 + $0x388] ss:$28 sps:$4 sm:$0xff]  }
 0x2f4   :  { %2383 = vmatprep.subr.bf16.mxu1 %v5451_v31  ;;  %v5556_v31 = vld [vmem:[%s7619_s8 + $0x3bc] ss:$28 sps:$4 sm:$0xff]  }
 0x2f7   :  { %2384 = vmatpush1.bf16.msra.mxu1 %v5449_v32  ;;  %v5559_v32 = vld [vmem:[%s7619_s8 + $0x3c4] ss:$28 sps:$4 sm:$0xff]  }
 0x2f8   :  { %3869 = vmatprep.subr.bf16.mxu1 %v5454_v33  ;;  %v5554_v33 = vld [vmem:[%s7619_s8 + $0x3b8] ss:$28 sps:$4 sm:$0xff]  }
 0x2fa   :  { %2402 = vmatmul.mubr.bf16.vlgmr.msra.gmra.mrb[8].mxu1 %v2111_v19 }
 0x2fb   :  { %3870 = vmatpush1.bf16.msra.mxu1 %v5452_v34  ;;  %v5557_v34 = vld [vmem:[%s7619_s8 + $0x3c0] ss:$28 sps:$4 sm:$0xff]  }
 0x2fc   :  { %3871 = vmatprep.subr.bf16.mxu1 %v5460_v35  ;;  %v5562_v35 = vld [vmem:[%s7619_s8 + $0x3f4] ss:$28 sps:$4 sm:$0xff]  }
 0x2ff   :  { %3872 = vmatpush1.bf16.msra.mxu1 %v5458_v36  ;;  %v5565_v36 = vld [vmem:[%s7619_s8 + $0x3fc] ss:$28 sps:$4 sm:$0xff]  }
 0x300   :  { %3873 = vmatprep.subr.bf16.mxu1 %v5466_v37  ;;  %v5560_v37 = vld [vmem:[%s7619_s8 + $0x3f0] ss:$28 sps:$4 sm:$0xff]  }
 0x303   :  { %3874 = vmatpush1.bf16.msra.mxu1 %v5464_v38  ;;  %v5563_v38 = vld [vmem:[%s7619_s8 + $0x3f8] ss:$28 sps:$4 sm:$0xff]  }
 0x304   :  { %3875 = vmatprep.subr.bf16.mxu1 %v5472_v39  ;;  %v5568_v39 = vld [vmem:[%s7619_s8 + $0x42c] ss:$28 sps:$4 sm:$0xff]  }
 0x307   :  { %3876 = vmatpush1.bf16.msra.mxu1 %v5470_v40  ;;  %v5571_v40 = vld [vmem:[%s7619_s8 + $0x434] ss:$28 sps:$4 sm:$0xff]  }
 0x308   :  { %3877 = vmatprep.subr.bf16.mxu1 %v5478_v41  ;;  %v5566_v41 = vld [vmem:[%s7619_s8 + $0x428] ss:$28 sps:$4 sm:$0xff]  }
 0x30b   :  { %3878 = vmatpush1.bf16.msra.mxu1 %v5476_v42  ;;  %v5569_v42 = vld [vmem:[%s7619_s8 + $0x430] ss:$28 sps:$4 sm:$0xff]  }
 0x30c   :  { %3879 = vmatprep.subr.bf16.mxu1 %v5484_v43  ;;  %v5574_v43 = vld [vmem:[%s7619_s8 + $0x464] ss:$28 sps:$4 sm:$0xff]  }
 0x30f   :  { %3880 = vmatpush1.bf16.msra.mxu1 %v5482_v44  ;;  %v5577_v44 = vld [vmem:[%s7619_s8 + $0x46c] ss:$28 sps:$4 sm:$0xff]  }
 0x310   :  { %3881 = vmatprep.subr.bf16.mxu1 %v5490_v45  ;;  %v5572_v45 = vld [vmem:[%s7619_s8 + $0x460] ss:$28 sps:$4 sm:$0xff]  }
 0x313   :  { %3882 = vmatpush1.bf16.msra.mxu1 %v5488_v46  ;;  %v5575_v46 = vld [vmem:[%s7619_s8 + $0x468] ss:$28 sps:$4 sm:$0xff]  }
 0x314   :  { %3883 = vmatprep.subr.bf16.mxu1 %v5496_v47  ;;  %v5580_v47 = vld [vmem:[%s7619_s8 + $0x49c] ss:$28 sps:$4 sm:$0xff]  }
 0x317   :  { %3884 = vmatpush1.bf16.msra.mxu1 %v5494_v48  ;;  %v5583_v48 = vld [vmem:[%s7619_s8 + $0x4a4] ss:$28 sps:$4 sm:$0xff]  }
 0x318   :  { %3885 = vmatprep.subr.bf16.mxu1 %v5502_v49  ;;  %v5578_v49 = vld [vmem:[%s7619_s8 + $0x498] ss:$28 sps:$4 sm:$0xff]  }
 0x31b   :  { %3886 = vmatpush1.bf16.msra.mxu1 %v5500_v50  ;;  %v5581_v50 = vld [vmem:[%s7619_s8 + $0x4a0] ss:$28 sps:$4 sm:$0xff]  }
 0x31c   :  { %3887 = vmatprep.subr.bf16.mxu1 %v5508_v51  ;;  %v2157_v51 = vrot.slane %v7063_v12, %v6643_v2 }
 0x31f   :  { %3888 = vmatpush1.bf16.msra.mxu1 %v5506_v52  ;;  %v5586_v52 = vld [vmem:[%s7619_s8 + $0x4d4] ss:$28 sps:$4 sm:$0xff]  }
 0x320   :  { %3889 = vmatprep.subr.bf16.mxu1 %v5514_v53  ;;  %v5589_v53 = vld [vmem:[%s7619_s8 + $0x4dc] ss:$28 sps:$4 sm:$0xff]  }
 0x323   :  { %3890 = vmatpush1.bf16.msra.mxu1 %v5512_v54  ;;  %v2161_v54 = vrot.slane %v7063_v12, %v6652_v5  ;;  %v5598_v12 = vld [vmem:[%s7619_s8 + $0x544] ss:$28 sps:$4 sm:$0xff]  }
 0x324   :  { %3891 = vmatprep.subr.bf16.mxu1 %v5520_v55 }
 0x327   :  { %3892 = vmatpush1.bf16.msra.mxu1 %v5518_v56  ;;  %v5584_v56 = vld [vmem:[%s7619_s8 + $0x4d0] ss:$28 sps:$4 sm:$0xff]  }
 0x328   :  { %3893 = vmatprep.subr.bf16.mxu1 %v5526_v57  ;;  %v5587_v57 = vld [vmem:[%s7619_s8 + $0x4d8] ss:$28 sps:$4 sm:$0xff]  }
 0x32b   :  { %3894 = vmatpush1.bf16.msra.mxu1 %v5524_v58 }
 0x32c   :  { %3895 = vmatprep.subr.bf16.mxu1 %v5532_v59 }
 0x32f   :  { %3896 = vmatpush1.bf16.msra.mxu1 %v5530_v60  ;;  %v5592_v60 = vld [vmem:[%s7619_s8 + $0x50c] ss:$28 sps:$4 sm:$0xff]  }
 0x330   :  { %3897 = vmatprep.subr.bf16.mxu1 %v5538_v61  ;;  %v5595_v61 = vld [vmem:[%s7619_s8 + $0x514] ss:$28 sps:$4 sm:$0xff]  }
 0x333   :  { %3898 = vmatpush1.bf16.msra.mxu1 %v5536_v63 }
 0x334   :  { %3899 = vmatprep.subr.bf16.mxu1 %v5544_v6 }
 0x337   :  { %3900 = vmatpush1.bf16.msra.mxu1 %v5542_v8  ;;  %v5590_v8 = vld [vmem:[%s7619_s8 + $0x508] ss:$28 sps:$4 sm:$0xff]  }
 0x338   :  { %3912 = vmatprep.subr.bf16.mxu1 %v5550_v10 }
 0x3ad   :  { %v2360_v15 = vpop.f32.mrb[4].mxu1 }
 0x3ae   :  { %v2361_v16 = vadd.f32 %v2360_v15, %v2149_v13  ;;  %v2362_v17 = vpop.f32.mrb[5].mxu1 }
 0x3af   :  { %v2363_v18 = vadd.f32 %v2362_v17, %v2153_v14  ;;  %v2364_v19 = vpop.f32.mrb[6].mxu1 }
 0x3b0   :  { %v2365_v20 = vadd.f32 %v2364_v19, %v2149_v13  ;;  %v2366_v21 = vpop.f32.mrb[7].mxu1  ;;  %v2412_v24 = vmax.f32 %v2361_v16, 0.0  ;;  %v5601_v13 = vld [vmem:[%s7619_s8 + $0x54c] ss:$28 sps:$4 sm:$0xff]  }
 0x3b1   :  { %v2367_v22 = vadd.f32 %v2366_v21, %v2153_v14  ;;  %v2413_v23 = vmax.f32 %v2363_v18, 0.0  ;;  %v5596_v18 = vld [vmem:[%s7619_s8 + $0x540] ss:$28 sps:$4 sm:$0xff]   ;;  %v5599_v19 = vld [vmem:[%s7619_s8 + $0x548] ss:$28 sps:$4 sm:$0xff]  }
 0x3b2   :  { %v2416_v25 = vmax.f32 %v2365_v20, 0.0  ;;  %v5604_v20 = vld [vmem:[%s7619_s8 + $0x57c] ss:$28 sps:$4 sm:$0xff]   ;;  %v5607_v21 = vld [vmem:[%s7619_s8 + $0x584] ss:$28 sps:$4 sm:$0xff]  }
 0x3b3   :  { %v2417_v26 = vmax.f32 %v2367_v22, 0.0  ;;  %v5602_v22 = vld [vmem:[%s7619_s8 + $0x578] ss:$28 sps:$4 sm:$0xff]  }
 0x3b4   :  { %v7069_v27 = vpack.c.bf16 %v2416_v25, %v2412_v24  ;;  %v5605_v24 = vld [vmem:[%s7619_s8 + $0x580] ss:$28 sps:$4 sm:$0xff]   ;;  %v5610_v25 = vld [vmem:[%s7619_s8 + $0x5b4] ss:$28 sps:$4 sm:$0xff]  }
 0x3b5   :  { %v7071_v28 = vpack.c.bf16 %v2417_v26, %v2413_v23  ;;  %v5613_v23 = vld [vmem:[%s7619_s8 + $0x5bc] ss:$28 sps:$4 sm:$0xff]   ;;  %v5608_v26 = vld [vmem:[%s7619_s8 + $0x5b0] ss:$28 sps:$4 sm:$0xff]  }
 0x3b7   :  { %3901 = vmatprep.mubr.bf16.mxu1 %v7071_v28  ;;  %3987 = vmatprep.mubr.bf16.mxu0 %v7071_v28 }
 0x3b8   :  { %3902 = vmatmul.mubr.bf16.vlgmr.msra.gmra.mrb[12].mxu1 %v7069_v27  ;;  %3988 = vmatmul.mubr.bf16.vlgmr.msra.gmra.mrb[8].mxu0 %v7069_v27 }
 0x3b9   :  { %3913 = vmatpush1.bf16.msra.mxu1 %v5548_v29  ;;  %3999 = vmatpush1.bf16.msra.mxu0 %v5551_v30  ;;  %v5611_v29 = vld [vmem:[%s7619_s8 + $0x5b8] ss:$28 sps:$4 sm:$0xff]   ;;  %v5616_v30 = vld [vmem:[%s7619_s8 + $0x5ec] ss:$28 sps:$4 sm:$0xff]  }
 0x3ba   :  { %3914 = vmatprep.subr.bf16.mxu1 %v5556_v31  ;;  %4000 = vmatprep.subr.bf16.mxu0 %v5559_v32  ;;  %v5619_v31 = vld [vmem:[%s7619_s8 + $0x5f4] ss:$28 sps:$4 sm:$0xff]   ;;  %v5614_v32 = vld [vmem:[%s7619_s8 + $0x5e8] ss:$28 sps:$4 sm:$0xff]  }
 0x3bd   :  { %3915 = vmatpush1.bf16.msra.mxu1 %v5554_v33  ;;  %4001 = vmatpush1.bf16.msra.mxu0 %v5557_v34  ;;  %v5617_v33 = vld [vmem:[%s7619_s8 + $0x5f0] ss:$28 sps:$4 sm:$0xff]   ;;  %v5622_v34 = vld [vmem:[%s7619_s8 + $0x624] ss:$28 sps:$4 sm:$0xff]  }
 0x3be   :  { %3916 = vmatprep.subr.bf16.mxu1 %v5562_v35  ;;  %4002 = vmatprep.subr.bf16.mxu0 %v5565_v36  ;;  %v5625_v35 = vld [vmem:[%s7619_s8 + $0x62c] ss:$28 sps:$4 sm:$0xff]   ;;  %v5620_v36 = vld [vmem:[%s7619_s8 + $0x620] ss:$28 sps:$4 sm:$0xff]  }
 0x3c1   :  { %3917 = vmatpush1.bf16.msra.mxu1 %v5560_v37  ;;  %4003 = vmatpush1.bf16.msra.mxu0 %v5563_v38  ;;  %v5623_v37 = vld [vmem:[%s7619_s8 + $0x628] ss:$28 sps:$4 sm:$0xff]   ;;  %v5628_v38 = vld [vmem:[%s7619_s8 + $0x65c] ss:$28 sps:$4 sm:$0xff]  }
 0x3c2   :  { %3918 = vmatprep.subr.bf16.mxu1 %v5568_v39  ;;  %4004 = vmatprep.subr.bf16.mxu0 %v5571_v40  ;;  %v5631_v39 = vld [vmem:[%s7619_s8 + $0x664] ss:$28 sps:$4 sm:$0xff]   ;;  %v5626_v40 = vld [vmem:[%s7619_s8 + $0x658] ss:$28 sps:$4 sm:$0xff]  }
 0x3c5   :  { %3919 = vmatpush1.bf16.msra.mxu1 %v5566_v41  ;;  %4005 = vmatpush1.bf16.msra.mxu0 %v5569_v42  ;;  %v5629_v41 = vld [vmem:[%s7619_s8 + $0x660] ss:$28 sps:$4 sm:$0xff]   ;;  %v5634_v42 = vld [vmem:[%s7619_s8 + $0x694] ss:$28 sps:$4 sm:$0xff]  }
 0x3c6   :  { %3920 = vmatprep.subr.bf16.mxu1 %v5574_v43  ;;  %4006 = vmatprep.subr.bf16.mxu0 %v5577_v44  ;;  %v5637_v43 = vld [vmem:[%s7619_s8 + $0x69c] ss:$28 sps:$4 sm:$0xff]   ;;  %v5632_v44 = vld [vmem:[%s7619_s8 + $0x690] ss:$28 sps:$4 sm:$0xff]  }
 0x3c9   :  { %3921 = vmatpush1.bf16.msra.mxu1 %v5572_v45  ;;  %4007 = vmatpush1.bf16.msra.mxu0 %v5575_v46  ;;  %v5635_v45 = vld [vmem:[%s7619_s8 + $0x698] ss:$28 sps:$4 sm:$0xff]   ;;  %v5640_v46 = vld [vmem:[%s7619_s8 + $0x6cc] ss:$28 sps:$4 sm:$0xff]  }
 0x3ca   :  { %3922 = vmatprep.subr.bf16.mxu1 %v5580_v47  ;;  %4008 = vmatprep.subr.bf16.mxu0 %v5583_v48  ;;  %v5643_v47 = vld [vmem:[%s7619_s8 + $0x6d4] ss:$28 sps:$4 sm:$0xff]   ;;  %v5638_v48 = vld [vmem:[%s7619_s8 + $0x6c8] ss:$28 sps:$4 sm:$0xff]  }
 0x3cd   :  { %v2403_v55 = vpop.f32.mrb[8].mxu1  ;;  %3923 = vmatpush1.bf16.msra.mxu1 %v5578_v49  ;;  %4009 = vmatpush1.bf16.msra.mxu0 %v5581_v50  ;;  %v5641_v49 = vld [vmem:[%s7619_s8 + $0x6d0] ss:$28 sps:$4 sm:$0xff]  }
 0x3ce   :  { %v2404_v58 = vadd.f32 %v2403_v55, %v2157_v51  ;;  %v2405_v59 = vpop.f32.mrb[9].mxu1  ;;  %3924 = vmatprep.subr.bf16.mxu1 %v5586_v52  ;;  %4010 = vmatprep.subr.bf16.mxu0 %v5589_v53  ;;  %v5646_v50 = vld [vmem:[%s7619_s8 + $0x14] ss:$28 sps:$4 sm:$0xff]  }
 0x3cf   :  { %v2406_v62 = vadd.f32 %v2405_v59, %v2161_v54  ;;  %v2407_v63 = vpop.f32.mrb[10].mxu1  ;;  %v5644_v52 = vld [vmem:[%s7619_s8 + $0x10] ss:$28 sps:$4 sm:$0xff]   ;;  %v5648_v53 = vld [vmem:[%s7619_s8 + $0x18] ss:$28 sps:$4 sm:$0xff]  }
 0x3d0   :  { %v2408_v3 = vadd.f32 %v2407_v63, %v2157_v51  ;;  %v2409_v6 = vpop.f32.mrb[11].mxu1  ;;  %v2414_v10 = vmax.f32 %v2404_v58, 0.0  ;;  %v5647_v51 = vld [vmem:[%s7619_s8 + $0x1d8] ss:$28 sps:$4 sm:$0xff]   ;;  %v5652_v55 = vld [vmem:[%s7619_s8 + $0x210] ss:$28 sps:$4 sm:$0xff]  }
 0x3d1   :  { %v2410_v7 = vadd.f32 %v2409_v6, %v2161_v54  ;;  %3925 = vmatpush1.bf16.msra.mxu1 %v5584_v56  ;;  %4011 = vmatpush1.bf16.msra.mxu0 %v5587_v57  ;;  %v2415_v14 = vmax.f32 %v2406_v62, 0.0  ;;  %v5651_v54 = vld [vmem:[%s7619_s8 + $0x4c] ss:$28 sps:$4 sm:$0xff]   ;;  %v5656_v58 = vld [vmem:[%s7619_s8 + $0x84] ss:$28 sps:$4 sm:$0xff]  }
 0x3d2   :  { %v2418_v11 = vmax.f32 %v2408_v3, 0.0  ;;  %3926 = vmatprep.subr.bf16.mxu1 %v5592_v60  ;;  %4012 = vmatprep.subr.bf16.mxu0 %v5595_v61  ;;  %v5649_v56 = vld [vmem:[%s7619_s8 + $0x48] ss:$28 sps:$4 sm:$0xff]   ;;  %v5653_v57 = vld [vmem:[%s7619_s8 + $0x50] ss:$28 sps:$4 sm:$0xff]  }
 0x3d3   :  { %v2419_v15 = vmax.f32 %v2410_v7, 0.0  ;;  %v5657_v59 = vld [vmem:[%s7619_s8 + $0x248] ss:$28 sps:$4 sm:$0xff]   ;;  %v5654_v60 = vld [vmem:[%s7619_s8 + $0x80] ss:$28 sps:$4 sm:$0xff]  }
 0x3d4   :  { %v7177_v16 = vpack.c.bf16 %v2418_v11, %v2414_v10  ;;  %v5661_v61 = vld [vmem:[%s7619_s8 + $0xbc] ss:$28 sps:$4 sm:$0xff]   ;;  %v5666_v6 = vld [vmem:[%s7619_s8 + $0xf4] ss:$28 sps:$4 sm:$0xff]   ;;  %v5671_v10 = vld [vmem:[%s7619_s8 + $0x12c] ss:$28 sps:$4 sm:$0xff]  }
 0x3d5   :  { %v7179_v17 = vpack.c.bf16 %v2419_v15, %v2415_v14  ;;  %3927 = vmatpush1.bf16.msra.mxu1 %v5590_v8  ;;  %4013 = vmatpush1.bf16.msra.mxu0 %v5593_v9  ;;  %v5662_v62 = vld [vmem:[%s7619_s8 + $0x280] ss:$28 sps:$4 sm:$0xff]   ;;  %v5659_v63 = vld [vmem:[%s7619_s8 + $0xb8] ss:$28 sps:$4 sm:$0xff]   ;;  %v5664_v8 = vld [vmem:[%s7619_s8 + $0xf0] ss:$28 sps:$4 sm:$0xff]  }
 0x3d6   :  { %3928 = vmatprep.subr.bf16.mxu1 %v5598_v12  ;;  %4014 = vmatprep.subr.bf16.mxu0 %v5601_v13  ;;  %v5663_v3 = vld [vmem:[%s7619_s8 + $0xc0] ss:$28 sps:$4 sm:$0xff]   ;;  %v5667_v7 = vld [vmem:[%s7619_s8 + $0x2b8] ss:$28 sps:$4 sm:$0xff]   ;;  %v5672_v11 = vld [vmem:[%s7619_s8 + $0x2f0] ss:$28 sps:$4 sm:$0xff]  }
 0x3d7   :  { %3944 = vmatprep.mubr.bf16.mxu1 %v7179_v17  ;;  %4030 = vmatprep.mubr.bf16.mxu0 %v7179_v17  ;;  %v5668_v9 = vld [vmem:[%s7619_s8 + $0xf8] ss:$28 sps:$4 sm:$0xff]   ;;  %v5669_v12 = vld [vmem:[%s7619_s8 + $0x128] ss:$28 sps:$4 sm:$0xff]   ;;  %v5673_v13 = vld [vmem:[%s7619_s8 + $0x130] ss:$28 sps:$4 sm:$0xff]  }
 0x3d8   :  { %v5676_v14 = vld [vmem:[%s7619_s8 + $0x164] ss:$28 sps:$4 sm:$0xff]  }
 0x3d9   :  { %3929 = vmatpush1.bf16.msra.mxu1 %v5596_v18  ;;  %4015 = vmatpush1.bf16.msra.mxu0 %v5599_v19  ;;  %v5677_v15 = vld [vmem:[%s7619_s8 + $0x328] ss:$28 sps:$4 sm:$0xff]   ;;  %v5674_v18 = vld [vmem:[%s7619_s8 + $0x160] ss:$28 sps:$4 sm:$0xff]  }
 0x3da   :  { %3930 = vmatprep.subr.bf16.mxu1 %v5604_v20  ;;  %4016 = vmatprep.subr.bf16.mxu0 %v5607_v21  ;;  %v5678_v19 = vld [vmem:[%s7619_s8 + $0x168] ss:$28 sps:$4 sm:$0xff]   ;;  %v5681_v20 = vld [vmem:[%s7619_s8 + $0x19c] ss:$28 sps:$4 sm:$0xff]  }
 0x3db   :  { %v5682_v21 = vld [vmem:[%s7619_s8 + $0x360] ss:$28 sps:$4 sm:$0xff]  }
 0x3dd   :  { %3931 = vmatpush1.bf16.msra.mxu1 %v5602_v22  ;;  %4017 = vmatpush1.bf16.msra.mxu0 %v5605_v24  ;;  %v5679_v22 = vld [vmem:[%s7619_s8 + $0x198] ss:$28 sps:$4 sm:$0xff]   ;;  %v5683_v24 = vld [vmem:[%s7619_s8 + $0x1a0] ss:$28 sps:$4 sm:$0xff]  }
 0x3de   :  { %3932 = vmatprep.subr.bf16.mxu1 %v5610_v25  ;;  %4018 = vmatprep.subr.bf16.mxu0 %v5613_v23  ;;  %v5686_v25 = vld [vmem:[%s7619_s8 + $0x1d4] ss:$28 sps:$4 sm:$0xff]  }
 0x3df   :  { %v5687_v23 = vld [vmem:[%s7619_s8 + $0x558] ss:$28 sps:$4 sm:$0xff]  }
 0x3e1   :  { %3933 = vmatpush1.bf16.msra.mxu1 %v5608_v26  ;;  %4019 = vmatpush1.bf16.msra.mxu0 %v5611_v29  ;;  %v5684_v26 = vld [vmem:[%s7619_s8 + $0x1d0] ss:$28 sps:$4 sm:$0xff]   ;;  %v5688_v29 = vld [vmem:[%s7619_s8 + $0x398] ss:$28 sps:$4 sm:$0xff]  }
 0x3e2   :  { %3934 = vmatprep.subr.bf16.mxu1 %v5616_v30  ;;  %4020 = vmatprep.subr.bf16.mxu0 %v5619_v31  ;;  %v5691_v30 = vld [vmem:[%s7619_s8 + $0x20c] ss:$28 sps:$4 sm:$0xff]  }
 0x3e3   :  { %v5692_v31 = vld [vmem:[%s7619_s8 + $0x590] ss:$28 sps:$4 sm:$0xff]  }
 0x3e5   :  { %3935 = vmatpush1.bf16.msra.mxu1 %v5614_v32  ;;  %4021 = vmatpush1.bf16.msra.mxu0 %v5617_v33  ;;  %v5689_v32 = vld [vmem:[%s7619_s8 + $0x208] ss:$28 sps:$4 sm:$0xff]   ;;  %v5693_v33 = vld [vmem:[%s7619_s8 + $0x3d0] ss:$28 sps:$4 sm:$0xff]  }
 0x3e6   :  { %3936 = vmatprep.subr.bf16.mxu1 %v5622_v34  ;;  %4022 = vmatprep.subr.bf16.mxu0 %v5625_v35  ;;  %v5696_v34 = vld [vmem:[%s7619_s8 + $0x244] ss:$28 sps:$4 sm:$0xff]  }
 0x3e7   :  { %v5697_v35 = vld [vmem:[%s7619_s8 + $0x5c8] ss:$28 sps:$4 sm:$0xff]  }
 0x3e9   :  { %3937 = vmatpush1.bf16.msra.mxu1 %v5620_v36  ;;  %4023 = vmatpush1.bf16.msra.mxu0 %v5623_v37  ;;  %v5694_v36 = vld [vmem:[%s7619_s8 + $0x240] ss:$28 sps:$4 sm:$0xff]   ;;  %v5698_v37 = vld [vmem:[%s7619_s8 + $0x408] ss:$28 sps:$4 sm:$0xff]  }
 0x3ea   :  { %3938 = vmatprep.subr.bf16.mxu1 %v5628_v38  ;;  %4024 = vmatprep.subr.bf16.mxu0 %v5631_v39  ;;  %v5701_v38 = vld [vmem:[%s7619_s8 + $0x27c] ss:$28 sps:$4 sm:$0xff]  }
 0x3eb   :  { %v5702_v39 = vld [vmem:[%s7619_s8 + $0x600] ss:$28 sps:$4 sm:$0xff]  }
 0x3ed   :  { %3939 = vmatpush1.bf16.msra.mxu1 %v5626_v40  ;;  %4025 = vmatpush1.bf16.msra.mxu0 %v5629_v41  ;;  %v5699_v40 = vld [vmem:[%s7619_s8 + $0x278] ss:$28 sps:$4 sm:$0xff]   ;;  %v5703_v41 = vld [vmem:[%s7619_s8 + $0x440] ss:$28 sps:$4 sm:$0xff]  }
 0x3ee   :  { %3940 = vmatprep.subr.bf16.mxu1 %v5634_v42  ;;  %4026 = vmatprep.subr.bf16.mxu0 %v5637_v43  ;;  %v5706_v42 = vld [vmem:[%s7619_s8 + $0x2b4] ss:$28 sps:$4 sm:$0xff]  }
 0x3ef   :  { %v5707_v43 = vld [vmem:[%s7619_s8 + $0x638] ss:$28 sps:$4 sm:$0xff]  }
 0x3f1   :  { %3941 = vmatpush1.bf16.msra.mxu1 %v5632_v44  ;;  %4027 = vmatpush1.bf16.msra.mxu0 %v5635_v45  ;;  %v5704_v44 = vld [vmem:[%s7619_s8 + $0x2b0] ss:$28 sps:$4 sm:$0xff]   ;;  %v5708_v45 = vld [vmem:[%s7619_s8 + $0x478] ss:$28 sps:$4 sm:$0xff]  }
 0x3f2   :  { %3942 = vmatprep.subr.bf16.mxu1 %v5640_v46  ;;  %4028 = vmatprep.subr.bf16.mxu0 %v5643_v47  ;;  %v5711_v46 = vld [vmem:[%s7619_s8 + $0x2ec] ss:$28 sps:$4 sm:$0xff]  }
 0x3f3   :  { %v5712_v47 = vld [vmem:[%s7619_s8 + $0x670] ss:$28 sps:$4 sm:$0xff]  }
 0x3f5   :  { %3943 = vmatpush1.bf16.msra.mxu1 %v5638_v48  ;;  %4029 = vmatpush1.bf16.msra.mxu0 %v5641_v49  ;;  %v5709_v48 = vld [vmem:[%s7619_s8 + $0x2e8] ss:$28 sps:$4 sm:$0xff]   ;;  %v5713_v49 = vld [vmem:[%s7619_s8 + $0x4b0] ss:$28 sps:$4 sm:$0xff]  }
 0x3f6   :  { %4041 = vmatprep.subr.bf16.mxu1 %v5646_v50  ;;  %4905 = vmatprep.subr.bf16.mxu0 %v5647_v51  ;;  %v5716_v50 = vld [vmem:[%s7619_s8 + $0x324] ss:$28 sps:$4 sm:$0xff]  }
 0x3f7   :  { %v5717_v51 = vld [vmem:[%s7619_s8 + $0x6a8] ss:$28 sps:$4 sm:$0xff]  }
 0x3f8   :  { %3945 = vmatmul.mubr.bf16.vlgmr.msra.gmra.mrb[12].mxu1 %v7177_v16  ;;  %4031 = vmatmul.mubr.bf16.vlgmr.msra.gmra.mrb[8].mxu0 %v7177_v16 }
 0x3f9   :  { %4042 = vmatpush1.bf16.msra.mxu1 %v5644_v52  ;;  %4073 = vmatprep.mubr.bf16.mxu1 %v7071_v28  ;;  %v5714_v52 = vld [vmem:[%s7619_s8 + $0x320] ss:$28 sps:$4 sm:$0xff]  }
 0x3fa   :  { %4906 = vmatpush3.bf16.msra.mxu0 %v5648_v53  ;;  %4159 = vmatprep.mubr.bf16.mxu0 %v7071_v28  ;;  %v5658_v28 = vld [vmem:[%s7619_s8 + $0x88] ss:$28 sps:$4 sm:$0xff]  }
 0x3fb   :  { %4043 = vmatprep.subr.bf16.mxu1 %v5651_v54  ;;  %4907 = vmatprep.subr.bf16.mxu0 %v5652_v55  ;;  %v5718_v53 = vld [vmem:[%s7619_s8 + $0x4e8] ss:$28 sps:$4 sm:$0xff]   ;;  %v5721_v54 = vld [vmem:[%s7619_s8 + $0x35c] ss:$28 sps:$4 sm:$0xff]  }
 0x3fc   :  { %v5722_v55 = vld [vmem:[%s7619_s8 + $0x6e0] ss:$28 sps:$4 sm:$0xff]  }
 0x3fd   :  { %4044 = vmatpush1.bf16.msra.mxu1 %v5649_v56  ;;  %v5719_v56 = vld [vmem:[%s7619_s8 + $0x358] ss:$28 sps:$4 sm:$0xff]  }
 0x3fe   :  { %4908 = vmatpush3.bf16.msra.mxu0 %v5653_v57  ;;  %4045 = vmatprep.subr.bf16.mxu1 %v5656_v58  ;;  %v5723_v57 = vld [vmem:[%s7619_s8 + $0x520] ss:$28 sps:$4 sm:$0xff]   ;;  %v5726_v58 = vld [vmem:[%s7619_s8 + $0x394] ss:$28 sps:$4 sm:$0xff]  }
 0x3ff   :  { %4909 = vmatprep.subr.bf16.mxu0 %v5657_v59  ;;  %v5724_v59 = vld [vmem:[%s7619_s8 + $0x390] ss:$28 sps:$4 sm:$0xff]  }
 0x401   :  { %4046 = vmatpush1.bf16.msra.mxu1 %v5654_v60  ;;  %v5729_v60 = vld [vmem:[%s7619_s8 + $0x3cc] ss:$28 sps:$4 sm:$0xff]  }
 0x402   :  { %4910 = vmatpush3.bf16.msra.mxu0 %v5658_v28  ;;  %4047 = vmatprep.subr.bf16.mxu1 %v5661_v61  ;;  %v5727_v28 = vld [vmem:[%s7619_s8 + $0x3c8] ss:$28 sps:$4 sm:$0xff]  }
 0x403   :  { %4911 = vmatprep.subr.bf16.mxu0 %v5662_v62  ;;  %v5732_v61 = vld [vmem:[%s7619_s8 + $0x404] ss:$28 sps:$4 sm:$0xff]  }
 0x404   :  { %v5730_v62 = vld [vmem:[%s7619_s8 + $0x400] ss:$28 sps:$4 sm:$0xff]  }
 0x405   :  { %4048 = vmatpush1.bf16.msra.mxu1 %v5659_v63  ;;  %v5738_v63 = vld [vmem:[%s7619_s8 + $0x474] ss:$28 sps:$4 sm:$0xff]  }
 0x406   :  { %4912 = vmatpush3.bf16.msra.mxu0 %v5663_v3  ;;  %4049 = vmatprep.subr.bf16.mxu1 %v5666_v6  ;;  %v5736_v3 = vld [vmem:[%s7619_s8 + $0x470] ss:$28 sps:$4 sm:$0xff]  }
 0x407   :  { %4913 = vmatprep.subr.bf16.mxu0 %v5667_v7  ;;  %v5741_v6 = vld [vmem:[%s7619_s8 + $0x4ac] ss:$28 sps:$4 sm:$0xff]  }
 0x408   :  { %v5739_v7 = vld [vmem:[%s7619_s8 + $0x4a8] ss:$28 sps:$4 sm:$0xff]  }
 0x409   :  { %4050 = vmatpush1.bf16.msra.mxu1 %v5664_v8  ;;  %v5744_v8 = vld [vmem:[%s7619_s8 + $0x4e4] ss:$28 sps:$4 sm:$0xff]  }
 0x40a   :  { %4914 = vmatpush3.bf16.msra.mxu0 %v5668_v9  ;;  %4051 = vmatprep.subr.bf16.mxu1 %v5671_v10  ;;  %v5742_v9 = vld [vmem:[%s7619_s8 + $0x4e0] ss:$28 sps:$4 sm:$0xff]  }
 0x40b   :  { %4915 = vmatprep.subr.bf16.mxu0 %v5672_v11  ;;  %v5747_v10 = vld [vmem:[%s7619_s8 + $0x51c] ss:$28 sps:$4 sm:$0xff]  }
 0x40c   :  { %v5745_v11 = vld [vmem:[%s7619_s8 + $0x518] ss:$28 sps:$4 sm:$0xff]  }
 0x40d   :  { %4052 = vmatpush1.bf16.msra.mxu1 %v5669_v12  ;;  %v5750_v12 = vld [vmem:[%s7619_s8 + $0x554] ss:$28 sps:$4 sm:$0xff]  }
 0x40e   :  { %4916 = vmatpush3.bf16.msra.mxu0 %v5673_v13  ;;  %4053 = vmatprep.subr.bf16.mxu1 %v5676_v14  ;;  %v5748_v13 = vld [vmem:[%s7619_s8 + $0x550] ss:$28 sps:$4 sm:$0xff]  }
 0x40f   :  { %4917 = vmatprep.subr.bf16.mxu0 %v5677_v15  ;;  %v5753_v14 = vld [vmem:[%s7619_s8 + $0x58c] ss:$28 sps:$4 sm:$0xff]  }
 0x410   :  { %v5751_v15 = vld [vmem:[%s7619_s8 + $0x588] ss:$28 sps:$4 sm:$0xff]  }
 0x411   :  { %4054 = vmatpush1.bf16.msra.mxu1 %v5674_v18  ;;  %v5756_v18 = vld [vmem:[%s7619_s8 + $0x5c4] ss:$28 sps:$4 sm:$0xff]  }
 0x412   :  { %4918 = vmatpush3.bf16.msra.mxu0 %v5678_v19  ;;  %4055 = vmatprep.subr.bf16.mxu1 %v5681_v20  ;;  %v5754_v19 = vld [vmem:[%s7619_s8 + $0x5c0] ss:$28 sps:$4 sm:$0xff]  }
 0x413   :  { %4919 = vmatprep.subr.bf16.mxu0 %v5682_v21  ;;  %v5759_v20 = vld [vmem:[%s7619_s8 + $0x5fc] ss:$28 sps:$4 sm:$0xff]  }
 0x414   :  { %v5757_v21 = vld [vmem:[%s7619_s8 + $0x5f8] ss:$28 sps:$4 sm:$0xff]  }
 0x415   :  { %4056 = vmatpush1.bf16.msra.mxu1 %v5679_v22  ;;  %v5762_v22 = vld [vmem:[%s7619_s8 + $0x634] ss:$28 sps:$4 sm:$0xff]  }
 0x416   :  { %4920 = vmatpush3.bf16.msra.mxu0 %v5683_v24  ;;  %4057 = vmatprep.subr.bf16.mxu1 %v5686_v25  ;;  %v5760_v24 = vld [vmem:[%s7619_s8 + $0x630] ss:$28 sps:$4 sm:$0xff]  }
 0x417   :  { %4927 = vmatprep.subr.bf16.mxu0 %v5687_v23  ;;  %v5765_v25 = vld [vmem:[%s7619_s8 + $0x66c] ss:$28 sps:$4 sm:$0xff]  }
 0x418   :  { %v5763_v23 = vld [vmem:[%s7619_s8 + $0x668] ss:$28 sps:$4 sm:$0xff]  }
 0x419   :  { %4160 = vmatmul.mubr.bf16.vlgmr.msra.gmra.mrb[12].mxu0 %v7069_v27  ;;  %4058 = vmatpush1.bf16.msra.mxu1 %v5684_v26  ;;  %v5768_v26 = vld [vmem:[%s7619_s8 + $0x6a4] ss:$28 sps:$4 sm:$0xff]  }
 0x41a   :  { %4928 = vmatpush3.bf16.msra.mxu0 %v5688_v29  ;;  %4200 = vmatprep.mubr.bf16.mxu0 %v7179_v17  ;;  %v5766_v29 = vld [vmem:[%s7619_s8 + $0x6a0] ss:$28 sps:$4 sm:$0xff]  }
 0x41b   :  { %4059 = vmatprep.subr.bf16.mxu1 %v5691_v30  ;;  %4929 = vmatprep.subr.bf16.mxu0 %v5692_v31  ;;  %v5771_v30 = vld [vmem:[%s7619_s8 + $0x6dc] ss:$28 sps:$4 sm:$0xff]  }
 0x41c   :  { %v5769_v31 = vld [vmem:[%s7619_s8 + $0x6d8] ss:$28 sps:$4 sm:$0xff]  }
 0x41d   :  { %4060 = vmatpush1.bf16.msra.mxu1 %v5689_v32  ;;  %v7574_v32 = vld [vmem:[%s7624_s9] sm:$0xff] }
 0x41e   :  { %4930 = vmatpush3.bf16.msra.mxu0 %v5693_v33  ;;  %4061 = vmatprep.subr.bf16.mxu1 %v5696_v34  ;;  %v2685_v33 = vrot.slane %v7574_v32, %v6640_v1  ;;  %v2693_v34 = vrot.slane %v7574_v32, %v6643_v2 }
 0x41f   :  { %4931 = vmatprep.subr.bf16.mxu0 %v5697_v35  ;;  %v2689_v35 = vrot.slane %v7574_v32, %v6649_v4 }
 0x421   :  { %4062 = vmatpush1.bf16.msra.mxu1 %v5694_v36  ;;  %v2697_v36 = vrot.slane %v7574_v32, %v6652_v5 }
 0x422   :  { %4932 = vmatpush3.bf16.msra.mxu0 %v5698_v37  ;;  %4063 = vmatprep.subr.bf16.mxu1 %v5701_v38 }
 0x423   :  { %4933 = vmatprep.subr.bf16.mxu0 %v5702_v39 }
 0x425   :  { %4064 = vmatpush1.bf16.msra.mxu1 %v5699_v40 }
 0x426   :  { %4934 = vmatpush3.bf16.msra.mxu0 %v5703_v41  ;;  %4065 = vmatprep.subr.bf16.mxu1 %v5706_v42 }
 0x427   :  { %4935 = vmatprep.subr.bf16.mxu0 %v5707_v43 }
 0x429   :  { %4066 = vmatpush1.bf16.msra.mxu1 %v5704_v44 }
 0x42a   :  { %4936 = vmatpush3.bf16.msra.mxu0 %v5708_v45  ;;  %4067 = vmatprep.subr.bf16.mxu1 %v5711_v46 }
 0x42b   :  { %4937 = vmatprep.subr.bf16.mxu0 %v5712_v47 }
 0x42d   :  { %4068 = vmatpush1.bf16.msra.mxu1 %v5709_v48 }
 0x42e   :  { %4938 = vmatpush3.bf16.msra.mxu0 %v5713_v49  ;;  %4069 = vmatprep.subr.bf16.mxu1 %v5716_v50 }
 0x42f   :  { %4939 = vmatprep.subr.bf16.mxu0 %v5717_v51 }
 0x431   :  { %4070 = vmatpush1.bf16.msra.mxu1 %v5714_v52 }
 0x432   :  { %4940 = vmatpush3.bf16.msra.mxu0 %v5718_v53  ;;  %4071 = vmatprep.subr.bf16.mxu1 %v5721_v54 }
 0x433   :  { %4941 = vmatprep.subr.bf16.mxu0 %v5722_v55 }
 0x435   :  { %4072 = vmatpush1.bf16.msra.mxu1 %v5719_v56 }
 0x436   :  { %4942 = vmatpush3.bf16.msra.mxu0 %v5723_v57  ;;  %4084 = vmatprep.subr.bf16.mxu1 %v5726_v58 }
 0x438   :  { %4074 = vmatmul.mubr.bf16.vlgmr.msra.gmra.mrb[16].mxu1 %v7069_v27  ;;  %v5735_v27 = vld [vmem:[%s7619_s8 + $0x43c] ss:$28 sps:$4 sm:$0xff]  }
 0x439   :  { %4201 = vmatmul.mubr.bf16.vlgmr.msra.gmra.mrb[16].mxu0 %v7177_v16  ;;  %4085 = vmatpush1.bf16.msra.mxu1 %v5724_v59 }
 0x43a   :  { %4116 = vmatprep.mubr.bf16.mxu1 %v7179_v17  ;;  %4086 = vmatprep.subr.bf16.mxu1 %v5729_v60  ;;  %v5733_v17 = vld [vmem:[%s7619_s8 + $0x438] ss:$28 sps:$4 sm:$0xff]  }
 0x43d   :  { %4087 = vmatpush1.bf16.msra.mxu1 %v5727_v28 }
 0x43e   :  { %4088 = vmatprep.subr.bf16.mxu1 %v5732_v61 }
 0x441   :  { %4089 = vmatpush1.bf16.msra.mxu1 %v5730_v62 }
 0x442   :  { %4090 = vmatprep.subr.bf16.mxu1 %v5735_v27 }
 0x445   :  { %4091 = vmatpush1.bf16.msra.mxu1 %v5733_v17 }
 0x446   :  { %4092 = vmatprep.subr.bf16.mxu1 %v5738_v63 }
 0x449   :  { %4093 = vmatpush1.bf16.msra.mxu1 %v5736_v3 }
 0x44a   :  { %4094 = vmatprep.subr.bf16.mxu1 %v5741_v6 }
 0x44d   :  { %4095 = vmatpush1.bf16.msra.mxu1 %v5739_v7 }
 0x44e   :  { %4096 = vmatprep.subr.bf16.mxu1 %v5744_v8 }
 0x451   :  { %4097 = vmatpush1.bf16.msra.mxu1 %v5742_v9 }
 0x452   :  { %4098 = vmatprep.subr.bf16.mxu1 %v5747_v10 }
 0x455   :  { %4099 = vmatpush1.bf16.msra.mxu1 %v5745_v11 }
 0x456   :  { %4100 = vmatprep.subr.bf16.mxu1 %v5750_v12 }
 0x459   :  { %4101 = vmatpush1.bf16.msra.mxu1 %v5748_v13 }
 0x45a   :  { %4102 = vmatprep.subr.bf16.mxu1 %v5753_v14 }
 0x45d   :  { %4103 = vmatpush1.bf16.msra.mxu1 %v5751_v15 }
 0x45e   :  { %4104 = vmatprep.subr.bf16.mxu1 %v5756_v18 }
 0x461   :  { %4105 = vmatpush1.bf16.msra.mxu1 %v5754_v19 }
 0x462   :  { %4106 = vmatprep.subr.bf16.mxu1 %v5759_v20 }
 0x465   :  { %4107 = vmatpush1.bf16.msra.mxu1 %v5757_v21 }
 0x466   :  { %4108 = vmatprep.subr.bf16.mxu1 %v5762_v22 }
 0x469   :  { %4109 = vmatpush1.bf16.msra.mxu1 %v5760_v24 }
 0x46a   :  { %4110 = vmatprep.subr.bf16.mxu1 %v5765_v25 }
 0x46d   :  { %4111 = vmatpush1.bf16.msra.mxu1 %v5763_v23 }
 0x46e   :  { %4112 = vmatprep.subr.bf16.mxu1 %v5768_v26 }
 0x471   :  { %4113 = vmatpush1.bf16.msra.mxu1 %v5766_v29 }
 0x472   :  { %4114 = vmatprep.subr.bf16.mxu1 %v5771_v30 }
 0x475   :  { %4115 = vmatpush1.bf16.msra.mxu1 %v5769_v31 }
 0x478   :  { %4117 = vmatmul.mubr.bf16.vlgmr.msra.gmra.mrb[16].mxu1 %v7177_v16 }
 0x4cb   :  { %v3946_v37 = vpop.f32.mrb[12].mxu1  ;;  %v4032_v38 = vpop.f32.mrb[8].mxu0 }
 0x4cc   :  { %v4961_v16 = vadd.f32 %v3946_v37, %v2685_v33  ;;  %v4965_v39 = vadd.f32 %v4032_v38, %v2693_v34  ;;  %v3948_v40 = vpop.f32.mrb[13].mxu1  ;;  %v4034_v41 = vpop.f32.mrb[9].mxu0 }
 0x4cd   :  { %v4962_v42 = vadd.f32 %v3948_v40, %v2689_v35  ;;  %v4966_v43 = vadd.f32 %v4034_v41, %v2697_v36  ;;  %v3950_v44 = vpop.f32.mrb[14].mxu1  ;;  %v4036_v45 = vpop.f32.mrb[10].mxu0 }
 0x4ce   :  { %v4875_v1 = vmul.f32 -1.442695, %v4961_v16  ;;  %v4877_v46 = vmul.f32 -1.442695, %v4965_v39  ;;  %v4963_v47 = vadd.f32 %v3950_v44, %v2685_v33  ;;  %v4967_v2 = vadd.f32 %v4036_v45, %v2693_v34  ;;  %v3952_v48 = vpop.f32.mrb[15].mxu1  ;;  %v4038_v49 = vpop.f32.mrb[11].mxu0 }
 0x4cf   :  { %v4876_v4 = vmul.f32 -1.442695, %v4962_v42  ;;  %v4878_v50 = vmul.f32 -1.442695, %v4966_v43  ;;  %v4964_v51 = vadd.f32 %v3952_v48, %v2689_v35  ;;  %v4968_v5 = vadd.f32 %v4038_v49, %v2697_v36 }
 0x4d0   :  { %5776 = vpow2.f32 %v4875_v1  ;;  %v4882_v52 = vmul.f32 -1.442695, %v4963_v47  ;;  %v4884_v53 = vmul.f32 -1.442695, %v4967_v2  ;;  %v2708_v33 = vsub.s32 6, %v6637_v0 }
 0x4d1   :  { %5778 = vpow2.f32 %v4877_v46  ;;  %v4883_v54 = vmul.f32 -1.442695, %v4964_v51  ;;  %v4885_v55 = vmul.f32 -1.442695, %v4968_v5  ;;  %v2700_v51 = vsub.s32 4, %v6637_v0 }
 0x4d2   :  { %5780 = vpow2.f32 %v4876_v4  ;;  %v2709_v34 = vrot.slane %v7574_v32, %v2708_v33  ;;  %v2704_v5 = vsub.s32 5, %v6637_v0 }
 0x4d3   :  { %5782 = vpow2.f32 %v4878_v50 }
 0x4d4   :  { %5784 = vpow2.f32 %v4882_v52  ;;  %v2701_v52 = vrot.slane %v7574_v32, %v2700_v51 }
 0x4d5   :  { %5786 = vpow2.f32 %v4884_v53  ;;  %v2705_v53 = vrot.slane %v7574_v32, %v2704_v5 }
 0x4d6   :  { %5788 = vpow2.f32 %v4883_v54 }
 0x4d7   :  { %5790 = vpow2.f32 %v4885_v55 }
 0x4da   :  { %v5777_v56 = vpop.eup %5776 }
 0x4db   :  { %v5779_v57 = vpop.eup %5778  ;;  %v4251_v58 = vadd.f32 1.0, %v5777_v56 }
 0x4dc   :  { %v5781_v59 = vpop.eup %5780  ;;  %v4253_v60 = vadd.f32 1.0, %v5779_v57 }
 0x4dd   :  { %v5783_v28 = vpop.eup %5782  ;;  %5792 = vrcp.f32 %v4251_v58  ;;  %v4252_v61 = vadd.f32 1.0, %v5781_v59 }
 0x4de   :  { %v5785_v62 = vpop.eup %5784  ;;  %5794 = vrcp.f32 %v4253_v60  ;;  %v4254_v27 = vadd.f32 1.0, %v5783_v28 }
 0x4df   :  { %v5787_v17 = vpop.eup %5786  ;;  %5796 = vrcp.f32 %v4252_v61  ;;  %v4258_v63 = vadd.f32 1.0, %v5785_v62 }
 0x4e0   :  { %v5789_v3 = vpop.eup %5788  ;;  %5798 = vrcp.f32 %v4254_v27  ;;  %v4260_v6 = vadd.f32 1.0, %v5787_v17 }
 0x4e1   :  { %v5791_v7 = vpop.eup %5790  ;;  %5800 = vrcp.f32 %v4258_v63  ;;  %v4259_v8 = vadd.f32 1.0, %v5789_v3 }
 0x4e2   :  { %5802 = vrcp.f32 %v4260_v6  ;;  %v4261_v9 = vadd.f32 1.0, %v5791_v7 }
 0x4e3   :  { %5804 = vrcp.f32 %v4259_v8 }
 0x4e4   :  { %5806 = vrcp.f32 %v4261_v9 }
 0x4e7   :  { %v5793_v10 = vpop.eup %5792 }
 0x4e8   :  { %v5795_v11 = vpop.eup %5794 }
 0x4e9   :  { %v5797_v12 = vpop.eup %5796 }
 0x4ea   :  { %v5799_v13 = vpop.eup %5798  ;;  %v4897_v14 = vpack.c.bf16 %v5797_v12, %v5793_v10 }
 0x4eb   :  { %v5801_v15 = vpop.eup %5800  ;;  %v4898_v18 = vpack.c.bf16 %v5799_v13, %v5795_v11 }
 0x4ec   :  { %v5803_v19 = vpop.eup %5802  ;;  %4337 = vst [vmem:[%s7625_s10] sm:$0xff] %v4897_v14  ;;  %v4921_v20 = vpop.f32.mrb[12].mxu0 }
 0x4ed   :  { %v5805_v21 = vpop.eup %5804  ;;  %4338 = vst [vmem:[%s7625_s10 + $0x8] sm:$0xff] %v4898_v18  ;;  %v4922_v22 = vpop.f32.mrb[13].mxu0 }
 0x4ee   :  { %v5807_v24 = vpop.eup %5806  ;;  %v4901_v25 = vpack.c.bf16 %v5805_v21, %v5801_v15  ;;  %v4923_v23 = vadd.f32 %v4922_v22, %v4921_v20  ;;  %v4924_v26 = vpop.f32.mrb[14].mxu0 }
 0x4ef   :  { %v4902_v29 = vpack.c.bf16 %v5807_v24, %v5803_v19  ;;  %v4925_v30 = vpop.f32.mrb[15].mxu0 }
 0x4f0   :  { %4341 = vst [vmem:[%s7625_s10 + $0x1c] sm:$0xff] %v4901_v25  ;;  %v4926_v31 = vadd.f32 %v4925_v30, %v4924_v26  ;;  %v4162_v37 = vadd.f32 %v4923_v23, %v2709_v34 }
 0x4f1   :  { %4342 = vst [vmem:[%s7625_s10 + $0x24] sm:$0xff] %v4902_v29 }
 0x4f2   :  { %v4165_v40 = vadd.f32 %v4926_v31, %v2709_v34 }
 0x50c   :  { %v4943_v35 = vpop.f32.mrb[16].mxu0 }
 0x50d   :  { %v4944_v36 = vpop.f32.mrb[17].mxu0 }
 0x50e   :  { %v4945_v38 = vadd.f32 %v4944_v36, %v4943_v35  ;;  %v4946_v16 = vpop.f32.mrb[18].mxu0 }
 0x50f   :  { %v4947_v39 = vpop.f32.mrb[19].mxu0 }
 0x510   :  { %v4203_v41 = vadd.f32 %v4945_v38, %v4162_v37  ;;  %v4948_v42 = vadd.f32 %v4947_v39, %v4946_v16 }
 0x512   :  { %v4881_v43 = vmul.f32 -1.442695, %v4203_v41  ;;  %v4206_v44 = vadd.f32 %v4948_v42, %v4165_v40 }
 0x514   :  { %5808 = vpow2.f32 %v4881_v43  ;;  %v4888_v45 = vmul.f32 -1.442695, %v4206_v44 }
 0x516   :  { %5810 = vpow2.f32 %v4888_v45 }
 0x51e   :  { %v5809_v1 = vpop.eup %5808 }
 0x51f   :  { %v4257_v46 = vadd.f32 1.0, %v5809_v1 }
 0x520   :  { %v5811_v47 = vpop.eup %5810 }
 0x521   :  { %5812 = vrcp.f32 %v4257_v46  ;;  %v4264_v2 = vadd.f32 1.0, %v5811_v47 }
 0x523   :  { %5814 = vrcp.f32 %v4264_v2 }
 0x52b   :  { %v5813_v48 = vpop.eup %5812 }
 0x52c   :  { %v4900_v49 = vpack.c.bf16 %v5813_v48, %v5813_v48 }
 0x52d   :  { %v5815_v4 = vpop.eup %5814 }
 0x52e   :  { %4340 = vst [vmem:[%s7625_s10 + $0x18] sm:$0xf] %v4900_v49  ;;  %v4904_v50 = vpack.c.bf16 %v5815_v4, %v5815_v4 }
 0x530   :  { %4344 = vst [vmem:[%s7625_s10 + $0x34] sm:$0xf] %v4904_v50 }
 0x54b   :  { %v4118_v54 = vpop.f32.mrb[16].mxu1 }
 0x54c   :  { %v4969_v55 = vadd.f32 %v4118_v54, %v2701_v52  ;;  %v4120_v56 = vpop.f32.mrb[17].mxu1 }
 0x54d   :  { %v4970_v57 = vadd.f32 %v4120_v56, %v2705_v53  ;;  %v4122_v58 = vpop.f32.mrb[18].mxu1 }
 0x54e   :  { %v4879_v59 = vmul.f32 -1.442695, %v4969_v55  ;;  %v4971_v60 = vadd.f32 %v4122_v58, %v2701_v52  ;;  %v4124_v28 = vpop.f32.mrb[19].mxu1 }
 0x54f   :  { %v4880_v61 = vmul.f32 -1.442695, %v4970_v57  ;;  %v4972_v62 = vadd.f32 %v4124_v28, %v2705_v53 }
 0x550   :  { %5816 = vpow2.f32 %v4879_v59  ;;  %v4886_v27 = vmul.f32 -1.442695, %v4971_v60 }
 0x551   :  { %5818 = vpow2.f32 %v4880_v61  ;;  %v4887_v17 = vmul.f32 -1.442695, %v4972_v62 }
 0x552   :  { %5820 = vpow2.f32 %v4886_v27 }
 0x553   :  { %5822 = vpow2.f32 %v4887_v17 }
 0x55a   :  { %v5817_v0 = vpop.eup %5816 }
 0x55b   :  { %v5819_v63 = vpop.eup %5818  ;;  %v4255_v3 = vadd.f32 1.0, %v5817_v0 }
 0x55c   :  { %v5821_v32 = vpop.eup %5820  ;;  %v4256_v6 = vadd.f32 1.0, %v5819_v63 }
 0x55d   :  { %v5823_v7 = vpop.eup %5822  ;;  %5824 = vrcp.f32 %v4255_v3  ;;  %v4262_v8 = vadd.f32 1.0, %v5821_v32 }
 0x55e   :  { %5826 = vrcp.f32 %v4256_v6  ;;  %v4263_v9 = vadd.f32 1.0, %v5823_v7 }
 0x55f   :  { %5828 = vrcp.f32 %v4262_v8 }
 0x560   :  { %5830 = vrcp.f32 %v4263_v9 }
 0x567   :  { %v5825_v10 = vpop.eup %5824 }
 0x568   :  { %v5827_v11 = vpop.eup %5826 }
 0x569   :  { %v5829_v12 = vpop.eup %5828  ;;  %v4899_v13 = vpack.c.bf16 %v5827_v11, %v5825_v10 }
 0x56a   :  { %v5831_v14 = vpop.eup %5830 }
 0x56b   :  { %4339 = vst [vmem:[%s7625_s10 + $0x10] sm:$0xff] %v4899_v13  ;;  %v4903_v15 = vpack.c.bf16 %v5831_v14, %v5829_v12 }
 0x56d   :  { %4343 = vst [vmem:[%s7625_s10 + $0x2c] sm:$0xff] %v4903_v15 }

</bundles_post_ra>
